<compile_context>
chip_gen: v7x
topology: tpu7x:2x2x1
jax: 0.10.0
libtpu: 0.0.40
codegen_flags: <defaults>
</compile_context>

<pallas_src>
import jax
import jax.numpy as jnp
from jax.experimental import pallas as pl
from jax.experimental.pallas import tpu as pltpu


def down_kernel(x_ref, w1_ref, b1_ref, w2_ref, b2_ref, o_ref,
                xp1_ref, col1_ref, xp2_ref, col2_ref):
    # x_ref: (Hp, 2, Wp, 2*Cin) for the current batch element.
    Hp, _, Wp, two_cin = x_ref.shape
    Cin = two_cin // 2
    Cmid = w1_ref.shape[1]
    Cout = w2_ref.shape[1]

    # ---- 2x2 max-pool (stride 2), entirely in registers --------------------
    top = x_ref[:, 0, :, :]                                # even rows (Hp, Wp, 2*Cin)
    bot = x_ref[:, 1, :, :]                                # odd rows
    rm = jnp.maximum(top, bot)
    pooled = jnp.maximum(rm[:, :, :Cin], rm[:, :, Cin:])   # (Hp, Wp, Cin)

    # ---- conv3x3 (pad=1, BN scale pre-folded) + bias + ReLU -----------------
    def conv3x3_bias_relu(inp, xp_ref, col_ref, w_ref, b_ref):
        cin = inp.shape[-1]
        # Zero only the 1-pixel border; the interior is fully overwritten.
        # Per-step on purpose (megacore-safe), and it is ~4/Wp of the interior
        # traffic so it is negligible.
        xp_ref[0:1, :, :] = jnp.zeros((1, Wp + 2, cin), jnp.float32)
        xp_ref[Hp + 1:Hp + 2, :, :] = jnp.zeros((1, Wp + 2, cin), jnp.float32)
        xp_ref[:, 0:1, :] = jnp.zeros((Hp + 2, 1, cin), jnp.float32)
        xp_ref[:, Wp + 1:Wp + 2, :] = jnp.zeros((Hp + 2, 1, cin), jnp.float32)
        xp_ref[1:Hp + 1, 1:Wp + 1, :] = inp
        # im2col pack: the 9 shifted taps side-by-side along the channel axis.
        for dy in range(3):
            for dx in range(3):
                t = dy * 3 + dx
                col_ref[:, :, t * cin:(t + 1) * cin] = \
                    xp_ref[dy:dy + Hp, dx:dx + Wp, :]
        # One MXU matmul: (Hp*Wp, 9*cin) @ (9*cin, cch).
        cols = col_ref[...].reshape(Hp * Wp, 9 * cin)
        acc = jnp.dot(cols, w_ref[...], preferred_element_type=jnp.float32)
        return jnp.maximum(acc + b_ref[...], 0.0)          # BN scale already in w

    h1 = conv3x3_bias_relu(pooled, xp1_ref, col1_ref, w1_ref, b1_ref)  # (Hp*Wp, Cmid)
    h1 = h1.reshape(Hp, Wp, Cmid)
    h2 = conv3x3_bias_relu(h1, xp2_ref, col2_ref, w2_ref, b2_ref)      # (Hp*Wp, Cout)
    o_ref[...] = h2.reshape(Hp, Wp, Cout).astype(o_ref.dtype)


def down_forward(x_nchw, w1_oihw, g1, be1, m1, v1, w2_oihw, g2, be2, m2, v2,
                 eps=1e-5):
    """x_nchw: (N, Cin, H, W) float32. Returns (N, Cout, H//2, W//2) float32."""
    N, Cin, H, W = x_nchw.shape
    assert H % 2 == 0 and W % 2 == 0, "MaxPool2d(2) path assumes even H, W"
    Hp, Wp = H // 2, W // 2
    Cmid = w1_oihw.shape[0]
    Cout = w2_oihw.shape[0]

    # Fold eval-mode BN into the convs: scale -> weights, bias -> per-channel add.
    s1 = g1 / jnp.sqrt(v1 + eps)
    s2 = g2 / jnp.sqrt(v2 + eps)
    b1 = (be1 - m1 * s1).reshape(1, Cmid)
    b2 = (be2 - m2 * s2).reshape(1, Cout)
    # OIHW -> HWIO, scale the out-channel axis, flatten to im2col weights.
    w1 = (jnp.transpose(w1_oihw, (2, 3, 1, 0)) * s1).reshape(9 * Cin, Cmid)
    w2 = (jnp.transpose(w2_oihw, (2, 3, 1, 0)) * s2).reshape(9 * Cmid, Cout)

    # NCHW -> NHWC, then split H/W into (half, 2) pairs so the in-kernel pool
    # is two dense maxima (no strided reads, no pooling scratch).
    x = jnp.transpose(x_nchw, (0, 2, 3, 1)).reshape(N, Hp, 2, Wp, 2 * Cin)

    flops = 2 * N * Hp * Wp * 9 * (Cin * Cmid + Cmid * Cout)
    bytes_accessed = 4 * (x.size + w1.size + w2.size + b1.size + b2.size
                          + N * Hp * Wp * Cout)
    cost = pl.CostEstimate(flops=flops, transcendentals=0,
                           bytes_accessed=bytes_accessed)

    out_nhwc = pl.pallas_call(
        down_kernel,
        out_shape=jax.ShapeDtypeStruct((N, Hp, Wp, Cout), jnp.float32),
        grid_spec=pltpu.PrefetchScalarGridSpec(
            num_scalar_prefetch=0,
            grid=(N,),
            in_specs=[
                pl.BlockSpec((None, Hp, 2, Wp, 2 * Cin),
                             lambda n: (n, 0, 0, 0, 0)),
                pl.BlockSpec((9 * Cin, Cmid), lambda n: (0, 0)),
                pl.BlockSpec((1, Cmid), lambda n: (0, 0)),
                pl.BlockSpec((9 * Cmid, Cout), lambda n: (0, 0)),
                pl.BlockSpec((1, Cout), lambda n: (0, 0)),
            ],
            out_specs=pl.BlockSpec((None, Hp, Wp, Cout), lambda n: (n, 0, 0, 0)),
            scratch_shapes=[
                pltpu.VMEM((Hp + 2, Wp + 2, Cin), jnp.float32),   # padded conv1 in
                pltpu.VMEM((Hp, Wp, 9 * Cin), jnp.float32),       # conv1 im2col
                pltpu.VMEM((Hp + 2, Wp + 2, Cmid), jnp.float32),  # padded conv2 in
                pltpu.VMEM((Hp, Wp, 9 * Cmid), jnp.float32),      # conv2 im2col
            ],
        ),
        compiler_params=pltpu.CompilerParams(
            dimension_semantics=("parallel",),
            vmem_limit_bytes=32 * 1024 * 1024,
        ),
        cost_estimate=cost,
    )(x, w1, b1, w2, b2)

    return jnp.transpose(out_nhwc, (0, 3, 1, 2))


# ---------------- pure-JAX reference (PyTorch semantics, BN eval mode) -------
def ref_down(x, w1_oihw, g1, be1, m1, v1, w2_oihw, g2, be2, m2, v2, eps=1e-5):
    y = jax.lax.reduce_window(x, -jnp.inf, jax.lax.max,
                              (1, 1, 2, 2), (1, 1, 2, 2), 'VALID')

    def conv_bn_relu(h, w, g, be, m, v):
        h = jax.lax.conv_general_dilated(
            h, w, (1, 1), 'SAME', dimension_numbers=('NCHW', 'OIHW', 'NCHW'))
        scale = g / jnp.sqrt(v + eps)
        bias = be - m * scale
        h = h * scale[None, :, None, None] + bias[None, :, None, None]
        return jnp.maximum(h, 0.0)

    y = conv_bn_relu(y, w1_oihw, g1, be1, m1, v1)
    y = conv_bn_relu(y, w2_oihw, g2, be2, m2, v2)
    return y


if __name__ == "__main__":
    key = jax.random.PRNGKey(0)
    N, Cin, H, W = 2, 4, 16, 16
    Cout = 8          # DoubleConv mid_channels defaults to out_channels
    Cmid = Cout
    eps = 1e-5

    ks = jax.random.split(key, 11)
    x = jax.random.normal(ks[0], (N, Cin, H, W), jnp.float32)

    # Conv weights (PyTorch OIHW), BN params (eval-mode running stats).
    w1_oihw = jax.random.normal(ks[1], (Cmid, Cin, 3, 3), jnp.float32) * 0.2
    g1 = 1.0 + 0.1 * jax.random.normal(ks[2], (Cmid,), jnp.float32)
    be1 = 0.1 * jax.random.normal(ks[3], (Cmid,), jnp.float32)
    m1 = 0.1 * jax.random.normal(ks[4], (Cmid,), jnp.float32)
    v1 = jax.random.uniform(ks[5], (Cmid,), jnp.float32, 0.5, 1.5)

    w2_oihw = jax.random.normal(ks[6], (Cout, Cmid, 3, 3), jnp.float32) * 0.2
    g2 = 1.0 + 0.1 * jax.random.normal(ks[7], (Cout,), jnp.float32)
    be2 = 0.1 * jax.random.normal(ks[8], (Cout,), jnp.float32)
    m2 = 0.1 * jax.random.normal(ks[9], (Cout,), jnp.float32)
    v2 = jax.random.uniform(ks[10], (Cout,), jnp.float32, 0.5, 1.5)

    out = down_forward(x, w1_oihw, g1, be1, m1, v1,
                       w2_oihw, g2, be2, m2, v2, eps)
    out = jax.block_until_ready(out)

    ref = ref_down(x, w1_oihw, g1, be1, m1, v1, w2_oihw, g2, be2, m2, v2, eps)
    assert out.shape == (N, Cout, H // 2, W // 2)
    assert jnp.allclose(out, ref, atol=1e-3, rtol=1e-3), (
        f"max abs err {jnp.max(jnp.abs(out - ref))}")

    print("KERNEL_OK")
</pallas_src>

<mosaic_0001>
module attributes {stable_mosaic.version = 11 : i64} {
  func.func @down_kernel(%arg0: i32, %arg1: memref<1x8x2x8x8xf32, #tpu.memory_space<vmem>>, %arg2: memref<36x8xf32, #tpu.memory_space<vmem>>, %arg3: memref<1x8xf32, #tpu.memory_space<vmem>>, %arg4: memref<72x8xf32, #tpu.memory_space<vmem>>, %arg5: memref<1x8xf32, #tpu.memory_space<vmem>>, %arg6: memref<1x8x8x8xf32, #tpu.memory_space<vmem>>, %arg7: memref<10x10x4xf32, #tpu.memory_space<vmem>>, %arg8: memref<8x8x36xf32, #tpu.memory_space<vmem>>, %arg9: memref<10x10x8xf32, #tpu.memory_space<vmem>>, %arg10: memref<8x8x72xf32, #tpu.memory_space<vmem>>) attributes {dimension_semantics = [#tpu.dimension_semantics<parallel>], iteration_bounds = array<i64: 2>, scalar_prefetch = 0 : i64, scratch_operands = 4 : i64, tpu.core_type = #tpu.core_type<tc>, window_params = [{transform_indices = @transform_0, window_bounds = array<i64: 1, 8, 2, 8, 8>}, {pipeline_mode = #tpu.pipeline_mode<synchronous>, transform_indices = @transform_1, window_bounds = array<i64: 36, 8>}, {pipeline_mode = #tpu.pipeline_mode<synchronous>, transform_indices = @transform_2, window_bounds = array<i64: 1, 8>}, {pipeline_mode = #tpu.pipeline_mode<synchronous>, transform_indices = @transform_3, window_bounds = array<i64: 72, 8>}, {pipeline_mode = #tpu.pipeline_mode<synchronous>, transform_indices = @transform_4, window_bounds = array<i64: 1, 8>}, {transform_indices = @transform_5, window_bounds = array<i64: 1, 8, 8, 8>}]} {
    %c0 = arith.constant 0 : index
    %c0_0 = arith.constant 0 : index
    %c0_1 = arith.constant 0 : index
    %c0_2 = arith.constant 0 : index
    %c0_3 = arith.constant 0 : index
    %0 = vector.load %arg1[%c0, %c0_0, %c0_1, %c0_2, %c0_3] : memref<1x8x2x8x8xf32, #tpu.memory_space<vmem>>, vector<1x8x1x8x8xf32>
    %1 = vector.shape_cast %0 : vector<1x8x1x8x8xf32> to vector<8x8x8xf32>
    %c0_4 = arith.constant 0 : index
    %c0_5 = arith.constant 0 : index
    %c1 = arith.constant 1 : index
    %c0_6 = arith.constant 0 : index
    %c0_7 = arith.constant 0 : index
    %2 = vector.load %arg1[%c0_4, %c0_5, %c1, %c0_6, %c0_7] : memref<1x8x2x8x8xf32, #tpu.memory_space<vmem>>, vector<1x8x1x8x8xf32>
    %3 = vector.shape_cast %2 : vector<1x8x1x8x8xf32> to vector<8x8x8xf32>
    %4 = arith.maximumf %1, %3 : vector<8x8x8xf32>
    %5 = vector.extract_strided_slice %4 {offsets = [0, 0, 0], sizes = [8, 8, 4], strides = [1, 1, 1]} : vector<8x8x8xf32> to vector<8x8x4xf32>
    %6 = vector.extract_strided_slice %4 {offsets = [0, 0, 4], sizes = [8, 8, 4], strides = [1, 1, 1]} : vector<8x8x8xf32> to vector<8x8x4xf32>
    %7 = arith.maximumf %5, %6 : vector<8x8x4xf32>
    %cst = arith.constant 0.000000e+00 : f32
    %8 = vector.broadcast %cst : f32 to vector<1x10x4xf32>
    %c0_8 = arith.constant 0 : index
    %c0_9 = arith.constant 0 : index
    %c0_10 = arith.constant 0 : index
    %9 = vector.load %arg7[%c0_8, %c0_9, %c0_10] : memref<10x10x4xf32, #tpu.memory_space<vmem>>, vector<1x10x4xf32>
    tpu.vector_store %arg7[%c0_8, %c0_9, %c0_10], %8 {strides = array<i32>} : memref<10x10x4xf32, #tpu.memory_space<vmem>>, vector<1x10x4xf32>,
    %cst_11 = arith.constant 0.000000e+00 : f32
    %10 = vector.broadcast %cst_11 : f32 to vector<1x10x4xf32>
    %c9 = arith.constant 9 : index
    %c0_12 = arith.constant 0 : index
    %c0_13 = arith.constant 0 : index
    %11 = vector.load %arg7[%c9, %c0_12, %c0_13] : memref<10x10x4xf32, #tpu.memory_space<vmem>>, vector<1x10x4xf32>
    tpu.vector_store %arg7[%c9, %c0_12, %c0_13], %10 {strides = array<i32>} : memref<10x10x4xf32, #tpu.memory_space<vmem>>, vector<1x10x4xf32>,
    %cst_14 = arith.constant 0.000000e+00 : f32
    %12 = vector.broadcast %cst_14 : f32 to vector<10x1x4xf32>
    %c0_15 = arith.constant 0 : index
    %c0_16 = arith.constant 0 : index
    %c0_17 = arith.constant 0 : index
    %13 = vector.load %arg7[%c0_15, %c0_16, %c0_17] : memref<10x10x4xf32, #tpu.memory_space<vmem>>, vector<10x1x4xf32>
    tpu.vector_store %arg7[%c0_15, %c0_16, %c0_17], %12 {strides = array<i32>} : memref<10x10x4xf32, #tpu.memory_space<vmem>>, vector<10x1x4xf32>,
    %cst_18 = arith.constant 0.000000e+00 : f32
    %14 = vector.broadcast %cst_18 : f32 to vector<10x1x4xf32>
    %c0_19 = arith.constant 0 : index
    %c9_20 = arith.constant 9 : index
    %c0_21 = arith.constant 0 : index
    %15 = vector.load %arg7[%c0_19, %c9_20, %c0_21] : memref<10x10x4xf32, #tpu.memory_space<vmem>>, vector<10x1x4xf32>
    tpu.vector_store %arg7[%c0_19, %c9_20, %c0_21], %14 {strides = array<i32>} : memref<10x10x4xf32, #tpu.memory_space<vmem>>, vector<10x1x4xf32>,
    %c1_22 = arith.constant 1 : index
    %c1_23 = arith.constant 1 : index
    %c0_24 = arith.constant 0 : index
    %16 = vector.load %arg7[%c1_22, %c1_23, %c0_24] : memref<10x10x4xf32, #tpu.memory_space<vmem>>, vector<8x8x4xf32>
    tpu.vector_store %arg7[%c1_22, %c1_23, %c0_24], %7 {strides = array<i32>} : memref<10x10x4xf32, #tpu.memory_space<vmem>>, vector<8x8x4xf32>,
    %c0_25 = arith.constant 0 : index
    %c0_26 = arith.constant 0 : index
    %c0_27 = arith.constant 0 : index
    %17 = vector.load %arg7[%c0_25, %c0_26, %c0_27] : memref<10x10x4xf32, #tpu.memory_space<vmem>>, vector<8x8x4xf32>
    %c0_28 = arith.constant 0 : index
    %c0_29 = arith.constant 0 : index
    %c0_30 = arith.constant 0 : index
    %18 = vector.load %arg8[%c0_28, %c0_29, %c0_30] : memref<8x8x36xf32, #tpu.memory_space<vmem>>, vector<8x8x4xf32>
    tpu.vector_store %arg8[%c0_28, %c0_29, %c0_30], %17 {strides = array<i32>} : memref<8x8x36xf32, #tpu.memory_space<vmem>>, vector<8x8x4xf32>,
    %c0_31 = arith.constant 0 : index
    %c1_32 = arith.constant 1 : index
    %c0_33 = arith.constant 0 : index
    %19 = vector.load %arg7[%c0_31, %c1_32, %c0_33] : memref<10x10x4xf32, #tpu.memory_space<vmem>>, vector<8x8x4xf32>
    %c0_34 = arith.constant 0 : index
    %c0_35 = arith.constant 0 : index
    %c4 = arith.constant 4 : index
    %20 = vector.load %arg8[%c0_34, %c0_35, %c4] : memref<8x8x36xf32, #tpu.memory_space<vmem>>, vector<8x8x4xf32>
    tpu.vector_store %arg8[%c0_34, %c0_35, %c4], %19 {strides = array<i32>} : memref<8x8x36xf32, #tpu.memory_space<vmem>>, vector<8x8x4xf32>,
    %c0_36 = arith.constant 0 : index
    %c2 = arith.constant 2 : index
    %c0_37 = arith.constant 0 : index
    %21 = vector.load %arg7[%c0_36, %c2, %c0_37] : memref<10x10x4xf32, #tpu.memory_space<vmem>>, vector<8x8x4xf32>
    %c0_38 = arith.constant 0 : index
    %c0_39 = arith.constant 0 : index
    %c8 = arith.constant 8 : index
    %22 = vector.load %arg8[%c0_38, %c0_39, %c8] : memref<8x8x36xf32, #tpu.memory_space<vmem>>, vector<8x8x4xf32>
    tpu.vector_store %arg8[%c0_38, %c0_39, %c8], %21 {strides = array<i32>} : memref<8x8x36xf32, #tpu.memory_space<vmem>>, vector<8x8x4xf32>,
    %c1_40 = arith.constant 1 : index
    %c0_41 = arith.constant 0 : index
    %c0_42 = arith.constant 0 : index
    %23 = vector.load %arg7[%c1_40, %c0_41, %c0_42] : memref<10x10x4xf32, #tpu.memory_space<vmem>>, vector<8x8x4xf32>
    %c0_43 = arith.constant 0 : index
    %c0_44 = arith.constant 0 : index
    %c12 = arith.constant 12 : index
    %24 = vector.load %arg8[%c0_43, %c0_44, %c12] : memref<8x8x36xf32, #tpu.memory_space<vmem>>, vector<8x8x4xf32>
    tpu.vector_store %arg8[%c0_43, %c0_44, %c12], %23 {strides = array<i32>} : memref<8x8x36xf32, #tpu.memory_space<vmem>>, vector<8x8x4xf32>,
    %c1_45 = arith.constant 1 : index
    %c1_46 = arith.constant 1 : index
    %c0_47 = arith.constant 0 : index
    %25 = vector.load %arg7[%c1_45, %c1_46, %c0_47] : memref<10x10x4xf32, #tpu.memory_space<vmem>>, vector<8x8x4xf32>
    %c0_48 = arith.constant 0 : index
    %c0_49 = arith.constant 0 : index
    %c16 = arith.constant 16 : index
    %26 = vector.load %arg8[%c0_48, %c0_49, %c16] : memref<8x8x36xf32, #tpu.memory_space<vmem>>, vector<8x8x4xf32>
    tpu.vector_store %arg8[%c0_48, %c0_49, %c16], %25 {strides = array<i32>} : memref<8x8x36xf32, #tpu.memory_space<vmem>>, vector<8x8x4xf32>,
    %c1_50 = arith.constant 1 : index
    %c2_51 = arith.constant 2 : index
    %c0_52 = arith.constant 0 : index
    %27 = vector.load %arg7[%c1_50, %c2_51, %c0_52] : memref<10x10x4xf32, #tpu.memory_space<vmem>>, vector<8x8x4xf32>
    %c0_53 = arith.constant 0 : index
    %c0_54 = arith.constant 0 : index
    %c20 = arith.constant 20 : index
    %28 = vector.load %arg8[%c0_53, %c0_54, %c20] : memref<8x8x36xf32, #tpu.memory_space<vmem>>, vector<8x8x4xf32>
    tpu.vector_store %arg8[%c0_53, %c0_54, %c20], %27 {strides = array<i32>} : memref<8x8x36xf32, #tpu.memory_space<vmem>>, vector<8x8x4xf32>,
    %c2_55 = arith.constant 2 : index
    %c0_56 = arith.constant 0 : index
    %c0_57 = arith.constant 0 : index
    %29 = vector.load %arg7[%c2_55, %c0_56, %c0_57] : memref<10x10x4xf32, #tpu.memory_space<vmem>>, vector<8x8x4xf32>
    %c0_58 = arith.constant 0 : index
    %c0_59 = arith.constant 0 : index
    %c24 = arith.constant 24 : index
    %30 = vector.load %arg8[%c0_58, %c0_59, %c24] : memref<8x8x36xf32, #tpu.memory_space<vmem>>, vector<8x8x4xf32>
    tpu.vector_store %arg8[%c0_58, %c0_59, %c24], %29 {strides = array<i32>} : memref<8x8x36xf32, #tpu.memory_space<vmem>>, vector<8x8x4xf32>,
    %c2_60 = arith.constant 2 : index
    %c1_61 = arith.constant 1 : index
    %c0_62 = arith.constant 0 : index
    %31 = vector.load %arg7[%c2_60, %c1_61, %c0_62] : memref<10x10x4xf32, #tpu.memory_space<vmem>>, vector<8x8x4xf32>
    %c0_63 = arith.constant 0 : index
    %c0_64 = arith.constant 0 : index
    %c28 = arith.constant 28 : index
    %32 = vector.load %arg8[%c0_63, %c0_64, %c28] : memref<8x8x36xf32, #tpu.memory_space<vmem>>, vector<8x8x4xf32>
    tpu.vector_store %arg8[%c0_63, %c0_64, %c28], %31 {strides = array<i32>} : memref<8x8x36xf32, #tpu.memory_space<vmem>>, vector<8x8x4xf32>,
    %c2_65 = arith.constant 2 : index
    %c2_66 = arith.constant 2 : index
    %c0_67 = arith.constant 0 : index
    %33 = vector.load %arg7[%c2_65, %c2_66, %c0_67] : memref<10x10x4xf32, #tpu.memory_space<vmem>>, vector<8x8x4xf32>
    %c0_68 = arith.constant 0 : index
    %c0_69 = arith.constant 0 : index
    %c32 = arith.constant 32 : index
    %34 = vector.load %arg8[%c0_68, %c0_69, %c32] : memref<8x8x36xf32, #tpu.memory_space<vmem>>, vector<8x8x4xf32>
    tpu.vector_store %arg8[%c0_68, %c0_69, %c32], %33 {strides = array<i32>} : memref<8x8x36xf32, #tpu.memory_space<vmem>>, vector<8x8x4xf32>,
    %c0_70 = arith.constant 0 : index
    %c0_71 = arith.constant 0 : index
    %c0_72 = arith.constant 0 : index
    %35 = vector.load %arg8[%c0_70, %c0_71, %c0_72] : memref<8x8x36xf32, #tpu.memory_space<vmem>>, vector<8x8x36xf32>
    %36 = vector.shape_cast %35 : vector<8x8x36xf32> to vector<64x36xf32>
    %c0_73 = arith.constant 0 : index
    %c0_74 = arith.constant 0 : index
    %37 = vector.load %arg2[%c0_73, %c0_74] : memref<36x8xf32, #tpu.memory_space<vmem>>, vector<36x8xf32>
    %cst_75 = arith.constant dense<0.000000e+00> : vector<64x8xf32>
    %38 = tpu.matmul %36, %37, %cst_75 {dimension_numbers = #tpu.dot_dimension_numbers<[1], [0], [0], [1], [0, 0, 1, 1], [], []>} : vector<64x36xf32>, vector<36x8xf32>, vector<64x8xf32> -> vector<64x8xf32>
    %c0_76 = arith.constant 0 : index
    %c0_77 = arith.constant 0 : index
    %39 = vector.load %arg3[%c0_76, %c0_77] : memref<1x8xf32, #tpu.memory_space<vmem>>, vector<1x8xf32>
    %40 = vector.broadcast %39 : vector<1x8xf32> to vector<64x8xf32>
    %41 = arith.addf %38, %40 : vector<64x8xf32>
    %cst_78 = arith.constant 0.000000e+00 : f32
    %42 = vector.broadcast %cst_78 : f32 to vector<64x8xf32>
    %43 = arith.maximumf %41, %42 : vector<64x8xf32>
    %44 = vector.shape_cast %43 : vector<64x8xf32> to vector<8x8x8xf32>
    %cst_79 = arith.constant 0.000000e+00 : f32
    %45 = vector.broadcast %cst_79 : f32 to vector<1x10x8xf32>
    %c0_80 = arith.constant 0 : index
    %c0_81 = arith.constant 0 : index
    %c0_82 = arith.constant 0 : index
    %46 = vector.load %arg9[%c0_80, %c0_81, %c0_82] : memref<10x10x8xf32, #tpu.memory_space<vmem>>, vector<1x10x8xf32>
    tpu.vector_store %arg9[%c0_80, %c0_81, %c0_82], %45 {strides = array<i32>} : memref<10x10x8xf32, #tpu.memory_space<vmem>>, vector<1x10x8xf32>,
    %cst_83 = arith.constant 0.000000e+00 : f32
    %47 = vector.broadcast %cst_83 : f32 to vector<1x10x8xf32>
    %c9_84 = arith.constant 9 : index
    %c0_85 = arith.constant 0 : index
    %c0_86 = arith.constant 0 : index
    %48 = vector.load %arg9[%c9_84, %c0_85, %c0_86] : memref<10x10x8xf32, #tpu.memory_space<vmem>>, vector<1x10x8xf32>
    tpu.vector_store %arg9[%c9_84, %c0_85, %c0_86], %47 {strides = array<i32>} : memref<10x10x8xf32, #tpu.memory_space<vmem>>, vector<1x10x8xf32>,
    %cst_87 = arith.constant 0.000000e+00 : f32
    %49 = vector.broadcast %cst_87 : f32 to vector<10x1x8xf32>
    %c0_88 = arith.constant 0 : index
    %c0_89 = arith.constant 0 : index
    %c0_90 = arith.constant 0 : index
    %50 = vector.load %arg9[%c0_88, %c0_89, %c0_90] : memref<10x10x8xf32, #tpu.memory_space<vmem>>, vector<10x1x8xf32>
    tpu.vector_store %arg9[%c0_88, %c0_89, %c0_90], %49 {strides = array<i32>} : memref<10x10x8xf32, #tpu.memory_space<vmem>>, vector<10x1x8xf32>,
    %cst_91 = arith.constant 0.000000e+00 : f32
    %51 = vector.broadcast %cst_91 : f32 to vector<10x1x8xf32>
    %c0_92 = arith.constant 0 : index
    %c9_93 = arith.constant 9 : index
    %c0_94 = arith.constant 0 : index
    %52 = vector.load %arg9[%c0_92, %c9_93, %c0_94] : memref<10x10x8xf32, #tpu.memory_space<vmem>>, vector<10x1x8xf32>
    tpu.vector_store %arg9[%c0_92, %c9_93, %c0_94], %51 {strides = array<i32>} : memref<10x10x8xf32, #tpu.memory_space<vmem>>, vector<10x1x8xf32>,
    %c1_95 = arith.constant 1 : index
    %c1_96 = arith.constant 1 : index
    %c0_97 = arith.constant 0 : index
    %53 = vector.load %arg9[%c1_95, %c1_96, %c0_97] : memref<10x10x8xf32, #tpu.memory_space<vmem>>, vector<8x8x8xf32>
    tpu.vector_store %arg9[%c1_95, %c1_96, %c0_97], %44 {strides = array<i32>} : memref<10x10x8xf32, #tpu.memory_space<vmem>>, vector<8x8x8xf32>,
    %c0_98 = arith.constant 0 : index
    %c0_99 = arith.constant 0 : index
    %c0_100 = arith.constant 0 : index
    %54 = vector.load %arg9[%c0_98, %c0_99, %c0_100] : memref<10x10x8xf32, #tpu.memory_space<vmem>>, vector<8x8x8xf32>
    %c0_101 = arith.constant 0 : index
    %c0_102 = arith.constant 0 : index
    %c0_103 = arith.constant 0 : index
    %55 = vector.load %arg10[%c0_101, %c0_102, %c0_103] : memref<8x8x72xf32, #tpu.memory_space<vmem>>, vector<8x8x8xf32>
    tpu.vector_store %arg10[%c0_101, %c0_102, %c0_103], %54 {strides = array<i32>} : memref<8x8x72xf32, #tpu.memory_space<vmem>>, vector<8x8x8xf32>,
    %c0_104 = arith.constant 0 : index
    %c1_105 = arith.constant 1 : index
    %c0_106 = arith.constant 0 : index
    %56 = vector.load %arg9[%c0_104, %c1_105, %c0_106] : memref<10x10x8xf32, #tpu.memory_space<vmem>>, vector<8x8x8xf32>
    %c0_107 = arith.constant 0 : index
    %c0_108 = arith.constant 0 : index
    %c8_109 = arith.constant 8 : index
    %57 = vector.load %arg10[%c0_107, %c0_108, %c8_109] : memref<8x8x72xf32, #tpu.memory_space<vmem>>, vector<8x8x8xf32>
    tpu.vector_store %arg10[%c0_107, %c0_108, %c8_109], %56 {strides = array<i32>} : memref<8x8x72xf32, #tpu.memory_space<vmem>>, vector<8x8x8xf32>,
    %c0_110 = arith.constant 0 : index
    %c2_111 = arith.constant 2 : index
    %c0_112 = arith.constant 0 : index
    %58 = vector.load %arg9[%c0_110, %c2_111, %c0_112] : memref<10x10x8xf32, #tpu.memory_space<vmem>>, vector<8x8x8xf32>
    %c0_113 = arith.constant 0 : index
    %c0_114 = arith.constant 0 : index
    %c16_115 = arith.constant 16 : index
    %59 = vector.load %arg10[%c0_113, %c0_114, %c16_115] : memref<8x8x72xf32, #tpu.memory_space<vmem>>, vector<8x8x8xf32>
    tpu.vector_store %arg10[%c0_113, %c0_114, %c16_115], %58 {strides = array<i32>} : memref<8x8x72xf32, #tpu.memory_space<vmem>>, vector<8x8x8xf32>,
    %c1_116 = arith.constant 1 : index
    %c0_117 = arith.constant 0 : index
    %c0_118 = arith.constant 0 : index
    %60 = vector.load %arg9[%c1_116, %c0_117, %c0_118] : memref<10x10x8xf32, #tpu.memory_space<vmem>>, vector<8x8x8xf32>
    %c0_119 = arith.constant 0 : index
    %c0_120 = arith.constant 0 : index
    %c24_121 = arith.constant 24 : index
    %61 = vector.load %arg10[%c0_119, %c0_120, %c24_121] : memref<8x8x72xf32, #tpu.memory_space<vmem>>, vector<8x8x8xf32>
    tpu.vector_store %arg10[%c0_119, %c0_120, %c24_121], %60 {strides = array<i32>} : memref<8x8x72xf32, #tpu.memory_space<vmem>>, vector<8x8x8xf32>,
    %c1_122 = arith.constant 1 : index
    %c1_123 = arith.constant 1 : index
    %c0_124 = arith.constant 0 : index
    %62 = vector.load %arg9[%c1_122, %c1_123, %c0_124] : memref<10x10x8xf32, #tpu.memory_space<vmem>>, vector<8x8x8xf32>
    %c0_125 = arith.constant 0 : index
    %c0_126 = arith.constant 0 : index
    %c32_127 = arith.constant 32 : index
    %63 = vector.load %arg10[%c0_125, %c0_126, %c32_127] : memref<8x8x72xf32, #tpu.memory_space<vmem>>, vector<8x8x8xf32>
    tpu.vector_store %arg10[%c0_125, %c0_126, %c32_127], %62 {strides = array<i32>} : memref<8x8x72xf32, #tpu.memory_space<vmem>>, vector<8x8x8xf32>,
    %c1_128 = arith.constant 1 : index
    %c2_129 = arith.constant 2 : index
    %c0_130 = arith.constant 0 : index
    %64 = vector.load %arg9[%c1_128, %c2_129, %c0_130] : memref<10x10x8xf32, #tpu.memory_space<vmem>>, vector<8x8x8xf32>
    %c0_131 = arith.constant 0 : index
    %c0_132 = arith.constant 0 : index
    %c40 = arith.constant 40 : index
    %65 = vector.load %arg10[%c0_131, %c0_132, %c40] : memref<8x8x72xf32, #tpu.memory_space<vmem>>, vector<8x8x8xf32>
    tpu.vector_store %arg10[%c0_131, %c0_132, %c40], %64 {strides = array<i32>} : memref<8x8x72xf32, #tpu.memory_space<vmem>>, vector<8x8x8xf32>,
    %c2_133 = arith.constant 2 : index
    %c0_134 = arith.constant 0 : index
    %c0_135 = arith.constant 0 : index
    %66 = vector.load %arg9[%c2_133, %c0_134, %c0_135] : memref<10x10x8xf32, #tpu.memory_space<vmem>>, vector<8x8x8xf32>
    %c0_136 = arith.constant 0 : index
    %c0_137 = arith.constant 0 : index
    %c48 = arith.constant 48 : index
    %67 = vector.load %arg10[%c0_136, %c0_137, %c48] : memref<8x8x72xf32, #tpu.memory_space<vmem>>, vector<8x8x8xf32>
    tpu.vector_store %arg10[%c0_136, %c0_137, %c48], %66 {strides = array<i32>} : memref<8x8x72xf32, #tpu.memory_space<vmem>>, vector<8x8x8xf32>,
    %c2_138 = arith.constant 2 : index
    %c1_139 = arith.constant 1 : index
    %c0_140 = arith.constant 0 : index
    %68 = vector.load %arg9[%c2_138, %c1_139, %c0_140] : memref<10x10x8xf32, #tpu.memory_space<vmem>>, vector<8x8x8xf32>
    %c0_141 = arith.constant 0 : index
    %c0_142 = arith.constant 0 : index
    %c56 = arith.constant 56 : index
    %69 = vector.load %arg10[%c0_141, %c0_142, %c56] : memref<8x8x72xf32, #tpu.memory_space<vmem>>, vector<8x8x8xf32>
    tpu.vector_store %arg10[%c0_141, %c0_142, %c56], %68 {strides = array<i32>} : memref<8x8x72xf32, #tpu.memory_space<vmem>>, vector<8x8x8xf32>,
    %c2_143 = arith.constant 2 : index
    %c2_144 = arith.constant 2 : index
    %c0_145 = arith.constant 0 : index
    %70 = vector.load %arg9[%c2_143, %c2_144, %c0_145] : memref<10x10x8xf32, #tpu.memory_space<vmem>>, vector<8x8x8xf32>
    %c0_146 = arith.constant 0 : index
    %c0_147 = arith.constant 0 : index
    %c64 = arith.constant 64 : index
    %71 = vector.load %arg10[%c0_146, %c0_147, %c64] : memref<8x8x72xf32, #tpu.memory_space<vmem>>, vector<8x8x8xf32>
    tpu.vector_store %arg10[%c0_146, %c0_147, %c64], %70 {strides = array<i32>} : memref<8x8x72xf32, #tpu.memory_space<vmem>>, vector<8x8x8xf32>,
    %c0_148 = arith.constant 0 : index
    %c0_149 = arith.constant 0 : index
    %c0_150 = arith.constant 0 : index
    %72 = vector.load %arg10[%c0_148, %c0_149, %c0_150] : memref<8x8x72xf32, #tpu.memory_space<vmem>>, vector<8x8x72xf32>
    %73 = vector.shape_cast %72 : vector<8x8x72xf32> to vector<64x72xf32>
    %c0_151 = arith.constant 0 : index
    %c0_152 = arith.constant 0 : index
    %74 = vector.load %arg4[%c0_151, %c0_152] : memref<72x8xf32, #tpu.memory_space<vmem>>, vector<72x8xf32>
    %cst_153 = arith.constant dense<0.000000e+00> : vector<64x8xf32>
    %75 = tpu.matmul %73, %74, %cst_153 {dimension_numbers = #tpu.dot_dimension_numbers<[1], [0], [0], [1], [0, 0, 1, 1], [], []>} : vector<64x72xf32>, vector<72x8xf32>, vector<64x8xf32> -> vector<64x8xf32>
    %c0_154 = arith.constant 0 : index
    %c0_155 = arith.constant 0 : index
    %76 = vector.load %arg5[%c0_154, %c0_155] : memref<1x8xf32, #tpu.memory_space<vmem>>, vector<1x8xf32>
    %77 = vector.broadcast %76 : vector<1x8xf32> to vector<64x8xf32>
    %78 = arith.addf %75, %77 : vector<64x8xf32>
    %cst_156 = arith.constant 0.000000e+00 : f32
    %79 = vector.broadcast %cst_156 : f32 to vector<64x8xf32>
    %80 = arith.maximumf %78, %79 : vector<64x8xf32>
    %81 = vector.shape_cast %80 : vector<64x8xf32> to vector<8x8x8xf32>
    %c0_157 = arith.constant 0 : index
    %c0_158 = arith.constant 0 : index
    %c0_159 = arith.constant 0 : index
    %c0_160 = arith.constant 0 : index
    %82 = vector.load %arg6[%c0_157, %c0_158, %c0_159, %c0_160] : memref<1x8x8x8xf32, #tpu.memory_space<vmem>>, vector<1x8x8x8xf32>
    %83 = vector.shape_cast %82 : vector<1x8x8x8xf32> to vector<8x8x8xf32>
    %84 = vector.shape_cast %81 : vector<8x8x8xf32> to vector<1x8x8x8xf32>
    tpu.vector_store %arg6[%c0_157, %c0_158, %c0_159, %c0_160], %84 {strides = array<i32>} : memref<1x8x8x8xf32, #tpu.memory_space<vmem>>, vector<1x8x8x8xf32>,
    return
  }
  func.func @transform_0(%arg0: i32) -> (i32, i32, i32, i32, i32) {
    %c0_i32 = arith.constant 0 : i32
    %c0_i32_0 = arith.constant 0 : i32
    %c0_i32_1 = arith.constant 0 : i32
    %c0_i32_2 = arith.constant 0 : i32
    %c0_i32_3 = arith.constant 0 : i32
    return %arg0, %c0_i32, %c0_i32_0, %c0_i32_1, %c0_i32_2 : i32, i32, i32, i32, i32
  }
  func.func @transform_1(%arg0: i32) -> (i32, i32) {
    %c0_i32 = arith.constant 0 : i32
    %c0_i32_0 = arith.constant 0 : i32
    %c0_i32_1 = arith.constant 0 : i32
    return %c0_i32, %c0_i32_0 : i32, i32
  }
  func.func @transform_2(%arg0: i32) -> (i32, i32) {
    %c0_i32 = arith.constant 0 : i32
    %c0_i32_0 = arith.constant 0 : i32
    %c0_i32_1 = arith.constant 0 : i32
    return %c0_i32, %c0_i32_0 : i32, i32
  }
  func.func @transform_3(%arg0: i32) -> (i32, i32) {
    %c0_i32 = arith.constant 0 : i32
    %c0_i32_0 = arith.constant 0 : i32
    %c0_i32_1 = arith.constant 0 : i32
    return %c0_i32, %c0_i32_0 : i32, i32
  }
  func.func @transform_4(%arg0: i32) -> (i32, i32) {
    %c0_i32 = arith.constant 0 : i32
    %c0_i32_0 = arith.constant 0 : i32
    %c0_i32_1 = arith.constant 0 : i32
    return %c0_i32, %c0_i32_0 : i32, i32
  }
  func.func @transform_5(%arg0: i32) -> (i32, i32, i32, i32) {
    %c0_i32 = arith.constant 0 : i32
    %c0_i32_0 = arith.constant 0 : i32
    %c0_i32_1 = arith.constant 0 : i32
    %c0_i32_2 = arith.constant 0 : i32
    return %arg0, %c0_i32, %c0_i32_0, %c0_i32_1 : i32, i32, i32, i32
  }
}

</mosaic_0001>

<bundles_post_ra>
// kernel: tpu_custom_call.1
= control target key start
LH: loop header
LB: loop body
LE: loop exit
PB: predicated region body
PF: predicated region fallthrough
CT: control target
= control target key end

     0   :  { %10 = vsyncpa [#allocation7], 0  ;;  %s2648_s0 = inlined_call_operand.hbm [shape: f32[2,8,2,8,8], index: 0, kind: input, shape index: {}]   ;;  %s2649_s1 = inlined_call_operand.vmem [shape: f32[36,8], index: 1, kind: input, shape index: {}]   ;;  %s2650_s2 = inlined_call_operand.vmem [shape: f32[1,8], index: 2, kind: input, shape index: {}]   ;;  %s2651_s3 = inlined_call_operand.vmem [shape: f32[72,8], index: 3, kind: input, shape index: {}]   ;;  %s2652_s4 = inlined_call_operand.vmem [shape: f32[1,8], index: 4, kind: input, shape index: {}]   ;;  %s2653_s5 = inlined_call_operand.hbm [shape: f32[2,8,8,8], index: 5, kind: output, shape index: {}]  }
   0x1   :  { %12 = vsyncpa [#allocation7 + $0x1], 0 }
   0x2   :  { %13 = vsyncpa [#allocation8], 0 }
   0x3   :  { %15 = vsyncpa [#allocation8 + $0x1], 0  ;;  %s1978_s18 = smov 0   ;;  %s1980_s19 = smov 0  }
   0x4   :  { %s1982_s20 = smov 0   ;;  %s1984_s21 = smov 0  }
   0x5 LB: > { %s1999_s22 = sadd.s32 4294967295, %s1927_s21   ;;  %s1619_s23 = sadd.s32 4294967294, %s1927_s21   ;;  %s1927_s21 = sphi %s1984_s21, %s2669_s21   ;;  %s1923_s20 = sphi %s1982_s20, %s2668_s20   ;;  %s1919_s19 = sphi %s1980_s19, %s2667_s19   ;;  %s1915_s18 = sphi %s1978_s18, %s2666_s18  }
   0x6   : > { %s2003_s24 = sadd.s32 1, %s1927_s21   ;;  %s28_s25 = sadd.s32 1, %s1923_s20 }
   0x7   : > { %s25_s26 = ssub.s32 %s1927_s21, %s2003_s24  ;;  %p35_p0 = scmp.ne.s32.totalorder %s1923_s20, %s1919_s19 }
   0x8   : > { %p26_p1 = scmp.eq.s32.totalorder %s25_s26, 0  ;;  %p36_p2 = scmp.eq.s32.totalorder %s1927_s21, 0 }
   0x9   : > { %p41_p3 = scmp.ne.s32.totalorder %s1919_s19, %s1915_s18  ;;  %p42_p4 = scmp.eq.s32.totalorder %s1999_s22, 0 }
   0xa   : > { %s2015_s27 = scalar_select %p26_p1, %s1923_s20, %s28_s25  }
   0xb   : > { %p2017_p5 = por %p36_p2, %p35_p0  ;;  %p2021_p6 = por %p42_p4, %p41_p3 }
   0xc   : > { %p149_p7 = scmp.eq.s32.totalorder %s1999_s22, 1  ;;  %p155_p8 = scmp.eq.s32.totalorder %s1619_s23, 1 }
   0xd   : > { %p1780_p10 = scmp.lt.s32.totalorder %s1927_s21, 2  ;;  %s187_s7 = sand.u32 1, %s1923_s20  }
   0xe   : > { %p2028_p11 = por %p149_p7, %p35_p0  ;;  %p2032_p12 = por %p155_p8, %p41_p3 }
   0xf   : > { %s1660_s8 = sshll.u32 %s1927_s21, 11  ;;  %s1622_s9 = sshll.u32 %s187_s7, 7 }
  0x10   : > { %s2659_s30 = scalar_select %p2028_p11, 1, 0 }
  0x11   : > { %s2660_s6 = scalar_select %p2032_p12, 1, 0 }
  0x12   : > { %s2041_s12 = scalar_lea.hbm %s2648_s0, %s1660_s8  ;;  %s191_s13 = scalar_lea.vmem [#allocation6], %s1622_s9 }
  0x13   : > { %s198_s14 = sshll.u32 %s191_s13, 4  ;;  %p2045_p13 = pnand %p1780_p10, %p2017_p5  ;;  %s2049_s14 = int_to_ptr.vmem [resolvable:$true] %s198_s14 }
  0x14   : > { %s2051_s16 = scalar_lea.sflag [#allocation7], %s187_s7  ;;  %s1831_s17 = scalar_lea.hbm %s2041_s12, 2048 }
  0x15   : > { %p1832_p0 = scmp.ne.s32.totalorder %s2041_s12, %s1831_s17  ;;  %p1833_p1 = pneg %p2045_p13 }
  0x16   : > { %s1836_s26 = scalar_lea.hbm %s2648_s0, 4096  ;;  %p1837_p4 = scmp.lt.u32.totalorder %s2041_s12, %s2648_s0 }
  0x17   : > { %p1834_p2 = pnand %p1833_p1, %p1832_p0  ;;  %p1838_p5 = scmp.lt.u32.totalorder %s1836_s26, %s1831_s17 }
  0x18   : > { %p1840_p8 = scmp.lt.u32.totalorder %s1831_s17, %s2041_s12 }
  0x19   : > { %p1835_p3 = pneg %p1834_p2  ;;  %p1839_p7 = por %p1838_p5, %p1837_p4 }
  0x1b   : > { %p1841_p10 = por %p1840_p8, %p1839_p7 }
  0x1d   : > { %p1842_p9 = pnand %p1841_p10, %p1835_p3 }
  0x1f   : > { %1845 = shalt.err (!%p1842_p9)
}
  0x20   : > { %s1846_s7 = scalar_lea.vmem %s2049_s14, 2048  ;;  %s1929_s9 = smov [#allocation6]  }
  0x21   : > { %p1847_p0 = scmp.ne.s32.totalorder %s2049_s14, %s1846_s7  ;;  %s1851_s10 = sshll.u32 %s1929_s9, 4  ;;  %s1852_s10 = int_to_ptr.vmem [resolvable:$false] %s1851_s10 }
  0x22   : > { %s1853_s11 = scalar_lea.vmem %s1852_s10, 4096  ;;  %p1854_p11 = scmp.lt.s32.totalorder %s2049_s14, %s1852_s10 }
  0x23   : > { %p1849_p2 = pnand %p1847_p0, %p1833_p1  ;;  %p1855_p4 = scmp.lt.s32.totalorder %s1853_s11, %s1846_s7 }
  0x25   : > { %p1850_p12 = pneg %p1849_p2  ;;  %p1856_p5 = por %p1855_p4, %p1854_p11 }
  0x27   : > { %p1857_p7 = pnand %p1856_p5, %p1850_p12 }
  0x29   : > { %1860 = shalt.err (!%p1857_p7)
}
  0x2a   : > { %s1930_s13 = smov 128   ;;  %s1931_s17 = smov 8  }
  0x2b   : > { %1775 = dma.hbm_to_vmem [thread:$0]  (!%p2045_p13), %s2041_s12, 2048, %s2049_s14, %s2051_s16, %s1930_s13, %s1930_s13, %s1931_s17  }
  0x2c   : > { %p1625_p9 = scmp.ge.s32.totalorder %s1927_s21, 1  ;;  %p206_p1 = scmp.lt.s32.totalorder %s1927_s21, 3 }
  0x2e   : > { %p207_p3 = pnand %p1625_p9, %p206_p1 }
  0x2f   : > { %s2082_s23 = sand.u32 (!%p207_p3), 1, %s1919_s19  }
  0x30   : > { %210 = sbr.rel (%p207_p3) target bundleno = 1069 (0x42d), region = 40  ;;  %s1626_s25 = sshll.u32 (!%p207_p3), %s2082_s23, 7 }
  0x31   : > { %s213_s26 = scalar_lea.sflag (!%p207_p3), [#allocation7], %s2082_s23  ;;  %s2086_s28 = scalar_lea.vmem (!%p207_p3), [#allocation6], %s1626_s25 }
  0x37   : > { %1906 = dma.done.wait (%p2021_p6), %s213_s26, 2048  }
  0x38   : > { %1908 = vsyncadd (%p2021_p6), %s213_s26, 4294965248  ;;  %vm308_vm0 = vcmask 31744   ;;  %vm310_vm1 = vcmask 25600   ;;  %vm315_vm2 = vcmask 24576   ;;  %v1932_v0 = vmov 0.0   ;;  %v243_v1 = vld [vmem:[%s2086_s28] sm:$0xff] }
  0x39   : > { %309 = vst.msk [vmem:[#allocation2] sm:$0xff] %vm308_vm0, %v1932_v0  ;;  %313 = vst.msk [vmem:[#allocation2 + $0x90] sm:$0xff] %vm308_vm0, %v1932_v0  ;;  %v1628_v2 = vld [vmem:[%s2086_s28 + $0x8] sm:$0xff]  ;;  %v244_v3 = vld [vmem:[%s2086_s28 + $0x10] sm:$0xff]  ;;  %s1933_s29 = smov 124   ;;  %s1934_s12 = smov 4  }
  0x3a   : > { %311 = vst.msk [vmem:[#allocation2 + $0x8] sm:$0x3] %vm310_vm1, %v1932_v0  ;;  %314 = vst.msk [vmem:[#allocation2 + $0x98] sm:$0x3] %vm310_vm1, %v1932_v0  ;;  %v260_v4 = vmax.f32 %v243_v1, %v1628_v2  ;;  %v1629_v5 = vld [vmem:[%s2086_s28 + $0x18] sm:$0xff]  ;;  %v245_v6 = vld [vmem:[%s2086_s28 + $0x20] sm:$0xff] }
  0x3b   : > { %317 = vst.msk [vmem:[#allocation2 + $0x10] sm:$0x1] %vm315_vm2, %v1932_v0  ;;  %318 = vst.msk [vmem:[#allocation2 + $0x20] sm:$0x1] %vm315_vm2, %v1932_v0  ;;  %v1630_v7 = vld [vmem:[%s2086_s28 + $0x28] sm:$0xff]  ;;  %v246_v9 = vld [vmem:[%s2086_s28 + $0x30] sm:$0xff]  ;;  %v261_v11 = vmax.f32 %v244_v3, %v1629_v5 }
  0x3c   : > { %319 = vst.msk [vmem:[#allocation2 + $0x30] sm:$0x1] %vm315_vm2, %v1932_v0  ;;  %320 = vst.msk [vmem:[#allocation2 + $0x40] sm:$0x1] %vm315_vm2, %v1932_v0  ;;  %v262_v8 = vmax.f32 %v245_v6, %v1630_v7  ;;  %v1631_v10 = vld [vmem:[%s2086_s28 + $0x38] sm:$0xff]  ;;  %276 = vrot.lane.b32.xlu0 %v260_v4, %s1933_s29  ;;  %v247_v13 = vld [vmem:[%s2086_s28 + $0x40] sm:$0xff] }
  0x3d   : > { %321 = vst.msk [vmem:[#allocation2 + $0x50] sm:$0x1] %vm315_vm2, %v1932_v0  ;;  %322 = vst.msk [vmem:[#allocation2 + $0x60] sm:$0x1] %vm315_vm2, %v1932_v0  ;;  %v263_v12 = vmax.f32 %v246_v9, %v1631_v10  ;;  %v1632_v14 = vld [vmem:[%s2086_s28 + $0x48] sm:$0xff]  ;;  %v248_v15 = vld [vmem:[%s2086_s28 + $0x50] sm:$0xff] }
  0x3e   : > { %323 = vst.msk [vmem:[#allocation2 + $0x70] sm:$0x1] %vm315_vm2, %v1932_v0  ;;  %324 = vst.msk [vmem:[#allocation2 + $0x80] sm:$0x1] %vm315_vm2, %v1932_v0  ;;  %280 = vrot.lane.b32.xlu1 %v262_v8, %s1933_s29  ;;  %v1633_v16 = vld [vmem:[%s2086_s28 + $0x58] sm:$0xff]  ;;  %v264_v17 = vmax.f32 %v247_v13, %v1632_v14  ;;  %v249_v19 = vld [vmem:[%s2086_s28 + $0x60] sm:$0xff] }
  0x3f   : > { %327 = vst.msk [vmem:[#allocation2 + $0x19] sm:$0x1] %vm315_vm2, %v1932_v0  ;;  %328 = vst.msk [vmem:[#allocation2 + $0x29] sm:$0x1] %vm315_vm2, %v1932_v0  ;;  %v265_v18 = vmax.f32 %v248_v15, %v1633_v16  ;;  %v1634_v20 = vld [vmem:[%s2086_s28 + $0x68] sm:$0xff]  ;;  %v250_v21 = vld [vmem:[%s2086_s28 + $0x70] sm:$0xff] }
  0x40   : > { %329 = vst.msk [vmem:[#allocation2 + $0x39] sm:$0x1] %vm315_vm2, %v1932_v0  ;;  %330 = vst.msk [vmem:[#allocation2 + $0x49] sm:$0x1] %vm315_vm2, %v1932_v0  ;;  %278 = vrot.lane.b32.xlu0 %v261_v11, %s1933_s29  ;;  %v1635_v22 = vld [vmem:[%s2086_s28 + $0x78] sm:$0xff]  ;;  %v266_v23 = vmax.f32 %v249_v19, %v1634_v20  ;;  %s1935_s14 = smov 24  }
  0x41   : > { %331 = vst.msk [vmem:[#allocation2 + $0x59] sm:$0x1] %vm315_vm2, %v1932_v0  ;;  %332 = vst.msk [vmem:[#allocation2 + $0x69] sm:$0x1] %vm315_vm2, %v1932_v0  ;;  %v267_v24 = vmax.f32 %v250_v21, %v1635_v22  ;;  %v361_v25 = vld [vmem:[#allocation2 + $0x1] sm:$0xff]  ;;  %s1936_s15 = smov 8  }
  0x42   : > { %333 = vst.msk [vmem:[#allocation2 + $0x79] sm:$0x1] %vm315_vm2, %v1932_v0  ;;  %334 = vst.msk [vmem:[#allocation2 + $0x89] sm:$0x1] %vm315_vm2, %v1932_v0  ;;  %282 = vrot.lane.b32.xlu1 %v263_v12, %s1933_s29  ;;  %s1937_s16 = smov 12   ;;  %vm401_vm3 = vcmask 64544  }
  0x43   : > { %316 = vst.msk [vmem:[#allocation2] sm:$0x1] %vm315_vm2, %v1932_v0  ;;  %326 = vst.msk [vmem:[#allocation2 + $0x9] sm:$0x1] %vm315_vm2, %v1932_v0  ;;  %s1938_s8 = smov 16   ;;  %vm450_vm4 = vcmask 97344  }
  0x44   : > { %325 = vst.msk [vmem:[#allocation2 + $0x90] sm:$0x1] %vm315_vm2, %v1932_v0  ;;  %335 = vst.msk [vmem:[#allocation2 + $0x99] sm:$0x1] %vm315_vm2, %v1932_v0  ;;  %284 = vrot.lane.b32.xlu0 %v264_v17, %s1933_s29  ;;  %s1939_s7 = smov 20   ;;  %v762_v60 = vld [vmem:[%s2649_s1] sm:$0xff] }
  0x45   : > { %v763_v61 = vld [vmem:[%s2649_s1 + $0x8] sm:$0xff]  ;;  %s1940_s17 = smov 28   ;;  %v764_v1 = vld [vmem:[%s2649_s1 + $0x10] sm:$0xff]  ;;  %v765_v2 = vld [vmem:[%s2649_s1 + $0x18] sm:$0xff]  ;;  %vm799_vm5 = vcmask 1043456   ;;  %s2655_s11 = smov 32  }
  0x46   : > { %286 = vrot.lane.b32.xlu1 %v265_v18, %s1933_s29  ;;  %v1744_v62 = vpack.c.bf16 %v763_v61, %v762_v60  ;;  %v1748_v3 = vpack.c.bf16 %v765_v2, %v764_v1  ;;  %vm499_vm6 = vcmask 130144   ;;  %v663_v16 = vld [vmem:[#allocation2 + $0x91] sm:$0xff]  ;;  %vm548_vm7 = vcmask 162944   ;;  %s1945_s25 = smov 64   ;;  %p2663_p11 = scmp.ne.s32.totalorder %s2659_s30, 0 }
  0x47   : > { %vm597_vm8 = vcmask 195744   ;;  %vm647_vm9 = vcmask 228544   ;;  %vm696_vm10 = vcmask 261344   ;;  %vm745_vm11 = vcmask 294144   ;;  %s1946_s13 = smov [#allocation9]  }
  0x48   : > { %288 = vrot.lane.b32.xlu0 %v266_v23, %s1933_s29  ;;  %1745 = vmatprep.subr.bf16.mxu0 %v1744_v62  ;;  %vm774_vm12 = vcmask 293888   ;;  %vm916_vm13 = vcmask 64512   ;;  %vm923_vm14 = vcmask 57344   ;;  %vm918_vm15 = vcmask 58368   ;;  %s1865_s26 = sshll.u32 %s1946_s13, 4  ;;  %s1866_s26 = int_to_ptr.vmem [resolvable:$false] %s1865_s26 }
  0x49   : > { %1747 = vmatpush3.bf16.msra.mxu0 %v1744_v62  ;;  %917 = vst.msk [vmem:[#allocation4] sm:$0xff] %vm916_vm13, %v1932_v0  ;;  %921 = vst.msk [vmem:[#allocation4 + $0x90] sm:$0xff] %vm916_vm13, %v1932_v0  ;;  %vm1058_vm1 = vcmask 195712   ;;  %vm1107_vm2 = vcmask 261312   ;;  %s1867_s28 = scalar_lea.vmem %s1866_s26, 2048 }
  0x4a   : > { %290 = vrot.lane.b32.xlu1 %v267_v24, %s1933_s29  ;;  %v410_v27 = vld [vmem:[#allocation2 + $0x2] sm:$0xff]  ;;  %1749 = vmatprep.subr.bf16.mxu0 %v1748_v3  ;;  %933 = vst.msk [vmem:[#allocation4 + $0x90] sm:$0x1] %vm923_vm14, %v1932_v0  ;;  %924 = vst.msk [vmem:[#allocation4] sm:$0x1] %vm923_vm14, %v1932_v0 }
  0x4b   : > { %v614_v26 = vld [vmem:[#allocation2 + $0x90] sm:$0xff]  ;;  %v345_v28 = vld [vmem:[#allocation2] sm:$0xff]  ;;  %925 = vst.msk [vmem:[#allocation4 + $0x10] sm:$0x1] %vm923_vm14, %v1932_v0  ;;  %926 = vst.msk [vmem:[#allocation4 + $0x20] sm:$0x1] %vm923_vm14, %v1932_v0 }
  0x4c   : > { %377 = vrot.lane.b32.xlu0 %v361_v25, %s1934_s12  ;;  %353 = vst.msk [vmem:[#allocation3] sm:$0xff] %vm308_vm0, %v345_v28  ;;  %v712_v19 = vld [vmem:[#allocation2 + $0x92] sm:$0xff] }
  0x4d   : > { %1751 = vmatpush3.bf16.msra.mxu0 %v1748_v3  ;;  %927 = vst.msk [vmem:[#allocation4 + $0x30] sm:$0x1] %vm923_vm14, %v1932_v0  ;;  %928 = vst.msk [vmem:[#allocation4 + $0x40] sm:$0x1] %vm923_vm14, %v1932_v0 }
  0x4e   : > { %637 = vrot.lane.b32.xlu1 %v614_v26, %s1935_s14  ;;  %929 = vst.msk [vmem:[#allocation4 + $0x50] sm:$0x1] %vm923_vm14, %v1932_v0  ;;  %930 = vst.msk [vmem:[#allocation4 + $0x60] sm:$0x1] %vm923_vm14, %v1932_v0 }
  0x4f   : > { %931 = vst.msk [vmem:[#allocation4 + $0x70] sm:$0x1] %vm923_vm14, %v1932_v0  ;;  %932 = vst.msk [vmem:[#allocation4 + $0x80] sm:$0x1] %vm923_vm14, %v1932_v0 }
  0x50   : > { %426 = vrot.lane.b32.xlu0 %v410_v27, %s1936_s15  ;;  %935 = vst.msk [vmem:[#allocation4 + $0x19] sm:$0x1] %vm923_vm14, %v1932_v0  ;;  %936 = vst.msk [vmem:[#allocation4 + $0x29] sm:$0x1] %vm923_vm14, %v1932_v0 }
  0x51   : > { %937 = vst.msk [vmem:[#allocation4 + $0x39] sm:$0x1] %vm923_vm14, %v1932_v0  ;;  %938 = vst.msk [vmem:[#allocation4 + $0x49] sm:$0x1] %vm923_vm14, %v1932_v0 }
  0x52   : > { %939 = vst.msk [vmem:[#allocation4 + $0x59] sm:$0x1] %vm923_vm14, %v1932_v0  ;;  %940 = vst.msk [vmem:[#allocation4 + $0x69] sm:$0x1] %vm923_vm14, %v1932_v0 }
  0x53   : > { %941 = vst.msk [vmem:[#allocation4 + $0x79] sm:$0x1] %vm923_vm14, %v1932_v0  ;;  %942 = vst.msk [vmem:[#allocation4 + $0x89] sm:$0x1] %vm923_vm14, %v1932_v0 }
  0x54   : > { %919 = vst.msk [vmem:[#allocation4 + $0x8] sm:$0x3] %vm918_vm15, %v1932_v0  ;;  %922 = vst.msk [vmem:[#allocation4 + $0x98] sm:$0x3] %vm918_vm15, %v1932_v0 }
  0x55   : > { %934 = vst.msk [vmem:[#allocation4 + $0x9] sm:$0x1] %vm923_vm14, %v1932_v0  ;;  %943 = vst.msk [vmem:[#allocation4 + $0x99] sm:$0x1] %vm923_vm14, %v1932_v0 }
  0xae   : > { %v277_v29 = vpop.permute.xlu0 %276 }
  0xaf   : > { %v300_v30 = vmax.f32 %v260_v4, %v277_v29  ;;  %v766_v4 = vld [vmem:[%s2649_s1 + $0x20] sm:$0xf] }
  0xb0   : > { %v281_v31 = vpop.permute.xlu1 %280  ;;  %1700 = vmatprep.subr.msk.mxu0 %vm799_vm5, %v766_v4 }
  0xb1   : > { %v302_v32 = vmax.f32 %v262_v8, %v281_v31  ;;  %337 = vst.msk [vmem:[#allocation2 + $0x11] sm:$0xff] %vm308_vm0, %v300_v30  ;;  %1701 = vmatpush3.msk.msra.mxu0 %vm799_vm5, %v766_v4  ;;  %vm1255_vm5 = vcmask 458112  }
  0xb2   : > { %v279_v33 = vpop.permute.xlu0 %278 }
  0xb3   : > { %339 = vst.msk [vmem:[#allocation2 + $0x31] sm:$0xff] %vm308_vm0, %v302_v32  ;;  %v301_v34 = vmax.f32 %v261_v11, %v279_v33 }
  0xb4   : > { %v283_v35 = vpop.permute.xlu1 %282 }
  0xb5   : > { %v303_v36 = vmax.f32 %v263_v12, %v283_v35  ;;  %338 = vst.msk [vmem:[#allocation2 + $0x21] sm:$0xff] %vm308_vm0, %v301_v34 }
  0xb6   : > { %v285_v37 = vpop.permute.xlu0 %284 }
  0xb7   : > { %340 = vst.msk [vmem:[#allocation2 + $0x41] sm:$0xff] %vm308_vm0, %v303_v36  ;;  %v304_v38 = vmax.f32 %v264_v17, %v285_v37 }
  0xb8   : > { %v287_v39 = vpop.permute.xlu1 %286  ;;  %v459_v40 = vld [vmem:[#allocation2 + $0x10] sm:$0xff] }
  0xb9   : > { %v362_v41 = vld [vmem:[#allocation2 + $0x11] sm:$0xff]  ;;  %v305_v42 = vmax.f32 %v265_v18, %v287_v39  ;;  %475 = vrot.lane.b32.xlu0 %v459_v40, %s1937_s16  ;;  %341 = vst.msk [vmem:[#allocation2 + $0x51] sm:$0xff] %vm308_vm0, %v304_v38  ;;  %354 = vst.msk [vmem:[#allocation3 + $0x8] sm:$0xff] %vm308_vm0, %v459_v40 }
  0xba   : > { %379 = vrot.lane.b32.xlu1 %v362_v41, %s1934_s12  ;;  %v608_v43 = vld [vmem:[#allocation2 + $0x30] sm:$0xff]  ;;  %v289_v44 = vpop.permute.xlu0 %288 }
  0xbb   : > { %342 = vst.msk [vmem:[#allocation2 + $0x61] sm:$0xff] %vm308_vm0, %v305_v42  ;;  %356 = vst.msk [vmem:[#allocation3 + $0x18] sm:$0xff] %vm308_vm0, %v608_v43  ;;  %v306_v45 = vmax.f32 %v266_v23, %v289_v44  ;;  %v411_v47 = vld [vmem:[#allocation2 + $0x12] sm:$0xff] }
  0xbc   : > { %v291_v46 = vpop.permute.xlu1 %290  ;;  %v460_v48 = vld [vmem:[#allocation2 + $0x20] sm:$0xff]  ;;  %v364_v55 = vld [vmem:[#allocation2 + $0x31] sm:$0xff] }
  0xbd   : > { %v307_v49 = vmax.f32 %v267_v24, %v291_v46  ;;  %524 = vrot.lane.b32.xlu0 %v362_v41, %s1938_s8  ;;  %343 = vst.msk [vmem:[#allocation2 + $0x71] sm:$0xff] %vm308_vm0, %v306_v45  ;;  %355 = vst.msk [vmem:[#allocation3 + $0x10] sm:$0xff] %vm308_vm0, %v460_v48  ;;  %v509_v51 = vld [vmem:[#allocation2 + $0x21] sm:$0xff]  ;;  %v413_v59 = vld [vmem:[#allocation2 + $0x32] sm:$0xff] }
  0xbe   : > { %428 = vrot.lane.b32.xlu1 %v411_v47, %s1936_s15  ;;  %v2170_v50 = vld [vmem:[#allocation2 + $0x40] sm:$0xff]  ;;  %v378_v52 = vpop.permute.xlu0 %377 }
  0xbf   : > { %344 = vst.msk [vmem:[#allocation2 + $0x81] sm:$0xff] %vm308_vm0, %v307_v49  ;;  %357 = vst.msk [vmem:[#allocation3 + $0x20] sm:$0xff] %vm308_vm0, %v2170_v50  ;;  %v558_v58 = vld [vmem:[#allocation2 + $0x22] sm:$0xff] }
  0xc0   : > { %402 = vst.msk [vmem:[#allocation3] sm:$0xff] %vm401_vm3, %v378_v52  ;;  %v610_v53 = vld [vmem:[#allocation2 + $0x50] sm:$0xff]  ;;  %v365_v63 = vld [vmem:[#allocation2 + $0x41] sm:$0xff]  ;;  %v2261_v14 = vpop.permute.xlu1 %637 }
  0xc1   : > { %526 = vrot.lane.b32.xlu0 %v509_v51, %s1938_s8  ;;  %358 = vst.msk [vmem:[#allocation3 + $0x28] sm:$0xff] %vm308_vm0, %v610_v53  ;;  %v366_v5 = vld [vmem:[#allocation2 + $0x51] sm:$0xff]  ;;  %v560_v6 = vld [vmem:[#allocation2 + $0x42] sm:$0xff] }
  0xc2   : > { %477 = vrot.lane.b32.xlu1 %v460_v48, %s1937_s16  ;;  %v2180_v54 = vld [vmem:[#allocation2 + $0x60] sm:$0xff]  ;;  %v427_v56 = vpop.permute.xlu0 %426  ;;  %v415_v7 = vld [vmem:[#allocation2 + $0x52] sm:$0xff] }
  0xc3   : > { %359 = vst.msk [vmem:[#allocation3 + $0x30] sm:$0xff] %vm308_vm0, %v2180_v54  ;;  %v367_v8 = vld [vmem:[#allocation2 + $0x61] sm:$0xff] }
  0xc4   : > { %451 = vst.msk [vmem:[#allocation3] sm:$0xff] %vm450_vm4, %v427_v56  ;;  %v2186_v57 = vld [vmem:[#allocation2 + $0x70] sm:$0xff]  ;;  %v562_v10 = vld [vmem:[#allocation2 + $0x62] sm:$0xff] }
  0xc5   : > { %383 = vrot.lane.b32.xlu0 %v364_v55, %s1934_s12  ;;  %360 = vst.msk [vmem:[#allocation3 + $0x38] sm:$0xff] %vm308_vm0, %v2186_v57  ;;  %v368_v9 = vld [vmem:[#allocation2 + $0x71] sm:$0xff]  ;;  %vm1009_vm0 = vcmask 130112  }
  0xc6   : > { %381 = vrot.lane.b32.xlu1 %v509_v51, %s1934_s12  ;;  %v417_v11 = vld [vmem:[#allocation2 + $0x72] sm:$0xff]  ;;  %v466_v12 = vld [vmem:[#allocation2 + $0x80] sm:$0xff] }
  0xc7   : > { %v515_v13 = vld [vmem:[#allocation2 + $0x81] sm:$0xff] }
  0xc8   : > { %v564_v15 = vld [vmem:[#allocation2 + $0x82] sm:$0xff] }
  0xc9   : > { %575 = vrot.lane.b32.xlu0 %v558_v58, %s1939_s7 }
  0xca   : > { %573 = vrot.lane.b32.xlu1 %v411_v47, %s1939_s7 }
  0xcd   : > { %432 = vrot.lane.b32.xlu0 %v413_v59, %s1936_s15 }
  0xce   : > { %430 = vrot.lane.b32.xlu1 %v558_v58, %s1936_s15 }
  0xd1   : > { %625 = vrot.lane.b32.xlu0 %v608_v43, %s1935_s14 }
  0xd2   : > { %623 = vrot.lane.b32.xlu1 %v460_v48, %s1935_s14 }
  0xd5   : > { %481 = vrot.lane.b32.xlu0 %v2170_v50, %s1937_s16 }
  0xd6   : > { %479 = vrot.lane.b32.xlu1 %v608_v43, %s1937_s16 }
  0xd9   : > { %674 = vrot.lane.b32.xlu0 %v364_v55, %s1940_s17 }
  0xda   : > { %672 = vrot.lane.b32.xlu1 %v509_v51, %s1940_s17 }
  0xdd   : > { %385 = vrot.lane.b32.xlu0 %v365_v63, %s1934_s12 }
  0xde   : > { %528 = vrot.lane.b32.xlu1 %v364_v55, %s1938_s8 }
  0xe1   : > { %577 = vrot.lane.b32.xlu0 %v413_v59, %s1939_s7 }
  0xe2   : > { %721 = vrot.lane.b32.xlu1 %v558_v58, %s2655_s11 }
  0xe5   : > { %387 = vrot.lane.b32.xlu0 %v366_v5, %s1934_s12 }
  0xe6   : > { %530 = vrot.lane.b32.xlu1 %v365_v63, %s1938_s8 }
  0xe9   : > { %579 = vrot.lane.b32.xlu0 %v560_v6, %s1939_s7 }
  0xea   : > { %723 = vrot.lane.b32.xlu1 %v413_v59, %s2655_s11 }
  0xed   : > { %436 = vrot.lane.b32.xlu0 %v415_v7, %s1936_s15 }
  0xee   : > { %434 = vrot.lane.b32.xlu1 %v560_v6, %s1936_s15 }
  0xf1   : > { %629 = vrot.lane.b32.xlu0 %v610_v53, %s1935_s14 }
  0xf2   : > { %627 = vrot.lane.b32.xlu1 %v2170_v50, %s1935_s14 }
  0xf5   : > { %485 = vrot.lane.b32.xlu0 %v2180_v54, %s1937_s16 }
  0xf6   : > { %483 = vrot.lane.b32.xlu1 %v610_v53, %s1937_s16 }
  0xf9   : > { %678 = vrot.lane.b32.xlu0 %v366_v5, %s1940_s17 }
  0xfa   : > { %676 = vrot.lane.b32.xlu1 %v365_v63, %s1940_s17 }
  0xfd   : > { %389 = vrot.lane.b32.xlu0 %v367_v8, %s1934_s12 }
  0xfe   : > { %532 = vrot.lane.b32.xlu1 %v366_v5, %s1938_s8 }
 0x101   : > { %581 = vrot.lane.b32.xlu0 %v415_v7, %s1939_s7 }
 0x102   : > { %725 = vrot.lane.b32.xlu1 %v560_v6, %s2655_s11 }
 0x105   : > { %391 = vrot.lane.b32.xlu0 %v368_v9, %s1934_s12  ;;  %s1942_s12 = smov 48  }
 0x106   : > { %534 = vrot.lane.b32.xlu1 %v367_v8, %s1938_s8 }
 0x109   : > { %583 = vrot.lane.b32.xlu0 %v562_v10, %s1939_s7 }
 0x10a   : > { %727 = vrot.lane.b32.xlu1 %v415_v7, %s2655_s11 }
 0x10d   : > { %440 = vrot.lane.b32.xlu0 %v417_v11, %s1936_s15 }
 0x10e   : > { %438 = vrot.lane.b32.xlu1 %v562_v10, %s1936_s15 }
 0x111   : > { %633 = vrot.lane.b32.xlu0 %v2186_v57, %s1935_s14 }
 0x112   : > { %631 = vrot.lane.b32.xlu1 %v2180_v54, %s1935_s14 }
 0x115   : > { %489 = vrot.lane.b32.xlu0 %v466_v12, %s1937_s16 }
 0x116   : > { %487 = vrot.lane.b32.xlu1 %v2186_v57, %s1937_s16  ;;  %s1943_s16 = smov 56  }
 0x119   : > { %682 = vrot.lane.b32.xlu0 %v368_v9, %s1940_s17 }
 0x11a   : > { %680 = vrot.lane.b32.xlu1 %v367_v8, %s1940_s17 }
 0x11d   : > { %538 = vrot.lane.b32.xlu0 %v515_v13, %s1938_s8 }
 0x11e   : > { %536 = vrot.lane.b32.xlu1 %v368_v9, %s1938_s8 }
 0x121   : > { %731 = vrot.lane.b32.xlu0 %v417_v11, %s2655_s11 }
 0x122   : > { %729 = vrot.lane.b32.xlu1 %v562_v10, %s2655_s11 }
 0x125   : > { %635 = vrot.lane.b32.xlu0 %v466_v12, %s1935_s14 }
 0x126   : > { %585 = vrot.lane.b32.xlu1 %v417_v11, %s1939_s7 }
 0x129   : > { %684 = vrot.lane.b32.xlu0 %v515_v13, %s1940_s17 }
 0x12a   : > { %587 = vrot.lane.b32.xlu1 %v564_v15, %s1939_s7 }
 0x12b   : > { %v476_v18 = vpop.permute.xlu0 %475 }
 0x12c   : > { %v380_v17 = vpop.permute.xlu1 %379  ;;  %500 = vst.msk [vmem:[#allocation3] sm:$0xff] %vm499_vm6, %v476_v18 }
 0x12d   : > { %403 = vst.msk [vmem:[#allocation3 + $0x8] sm:$0xff] %vm401_vm3, %v380_v17  ;;  %733 = vrot.lane.b32.xlu0 %v564_v15, %s2655_s11 }
 0x12e   : > { %686 = vrot.lane.b32.xlu1 %v663_v16, %s1940_s17  ;;  %s1944_s17 = smov 40  }
 0x12f   : > { %v525_v21 = vpop.permute.xlu0 %524 }
 0x130   : > { %v429_v20 = vpop.permute.xlu1 %428  ;;  %549 = vst.msk [vmem:[#allocation3] sm:$0xff] %vm548_vm7, %v525_v21 }
 0x131   : > { %452 = vst.msk [vmem:[#allocation3 + $0x8] sm:$0xff] %vm450_vm4, %v429_v20 }
 0x132   : > { %735 = vrot.lane.b32.xlu1 %v712_v19, %s2655_s11 }
 0x133   : > { %v527_v23 = vpop.permute.xlu0 %526 }
 0x134   : > { %v478_v22 = vpop.permute.xlu1 %477 }
 0x135   : > { %501 = vst.msk [vmem:[#allocation3 + $0x8] sm:$0xff] %vm499_vm6, %v478_v22 }
 0x136   : > { %550 = vst.msk [vmem:[#allocation3 + $0x8] sm:$0xff] %vm548_vm7, %v527_v23 }
 0x137   : > { %v384_v25 = vpop.permute.xlu0 %383 }
 0x138   : > { %v382_v24 = vpop.permute.xlu1 %381  ;;  %405 = vst.msk [vmem:[#allocation3 + $0x18] sm:$0xff] %vm401_vm3, %v384_v25  ;;  %v969_v25 = vld [vmem:[#allocation4 + $0x1] sm:$0xff] }
 0x139   : > { %404 = vst.msk [vmem:[#allocation3 + $0x10] sm:$0xff] %vm401_vm3, %v382_v24  ;;  %985 = vrot.lane.b32.xlu0 %v969_v25, %s1936_s15 }
 0x13b   : > { %v576_v27 = vpop.permute.xlu0 %575 }
 0x13c   : > { %v574_v26 = vpop.permute.xlu1 %573  ;;  %599 = vst.msk [vmem:[#allocation3 + $0x8] sm:$0xff] %vm597_vm8, %v576_v27  ;;  %v1018_v27 = vld [vmem:[#allocation4 + $0x2] sm:$0xff] }
 0x13d   : > { %598 = vst.msk [vmem:[#allocation3] sm:$0xff] %vm597_vm8, %v574_v26  ;;  %v1271_v26 = vld [vmem:[#allocation4 + $0x91] sm:$0xff]  ;;  %1034 = vrot.lane.b32.xlu0 %v1018_v27, %s1938_s8 }
 0x13f   : > { %v433_v29 = vpop.permute.xlu0 %432 }
 0x140   : > { %v431_v28 = vpop.permute.xlu1 %430  ;;  %454 = vst.msk [vmem:[#allocation3 + $0x18] sm:$0xff] %vm450_vm4, %v433_v29 }
 0x141   : > { %453 = vst.msk [vmem:[#allocation3 + $0x10] sm:$0xff] %vm450_vm4, %v431_v28  ;;  %v953_v28 = vld [vmem:[#allocation4] sm:$0xff] }
 0x142   : > { %961 = vst.msk [vmem:[#allocation5] sm:$0xff] %vm916_vm13, %v953_v28 }
 0x143   : > { %v626_v31 = vpop.permute.xlu0 %625 }
 0x144   : > { %v624_v30 = vpop.permute.xlu1 %623  ;;  %649 = vst.msk [vmem:[#allocation3 + $0x8] sm:$0xff] %vm647_vm9, %v626_v31 }
 0x145   : > { %648 = vst.msk [vmem:[#allocation3] sm:$0xff] %vm647_vm9, %v624_v30  ;;  %v2397_v30 = vld [vmem:[%s2650_s2] ss:$0 sm:$0xff] }
 0x147   : > { %v482_v33 = vpop.permute.xlu0 %481 }
 0x148   : > { %v480_v32 = vpop.permute.xlu1 %479  ;;  %503 = vst.msk [vmem:[#allocation3 + $0x18] sm:$0xff] %vm499_vm6, %v482_v33 }
 0x149   : > { %502 = vst.msk [vmem:[#allocation3 + $0x10] sm:$0xff] %vm499_vm6, %v480_v32 }
 0x14b   : > { %v675_v35 = vpop.permute.xlu0 %674 }
 0x14c   : > { %v673_v34 = vpop.permute.xlu1 %672  ;;  %698 = vst.msk [vmem:[#allocation3 + $0x8] sm:$0xff] %vm696_vm10, %v675_v35 }
 0x14d   : > { %697 = vst.msk [vmem:[#allocation3] sm:$0xff] %vm696_vm10, %v673_v34 }
 0x14f   : > { %v386_v37 = vpop.permute.xlu0 %385 }
 0x150   : > { %v529_v36 = vpop.permute.xlu1 %528  ;;  %406 = vst.msk [vmem:[#allocation3 + $0x20] sm:$0xff] %vm401_vm3, %v386_v37 }
 0x151   : > { %551 = vst.msk [vmem:[#allocation3 + $0x10] sm:$0xff] %vm548_vm7, %v529_v36 }
 0x153   : > { %v578_v39 = vpop.permute.xlu0 %577 }
 0x154   : > { %v722_v38 = vpop.permute.xlu1 %721  ;;  %600 = vst.msk [vmem:[#allocation3 + $0x10] sm:$0xff] %vm597_vm8, %v578_v39 }
 0x155   : > { %746 = vst.msk [vmem:[#allocation3] sm:$0xff] %vm745_vm11, %v722_v38 }
 0x157   : > { %v388_v41 = vpop.permute.xlu0 %387 }
 0x158   : > { %v531_v40 = vpop.permute.xlu1 %530  ;;  %407 = vst.msk [vmem:[#allocation3 + $0x28] sm:$0xff] %vm401_vm3, %v388_v41 }
 0x159   : > { %552 = vst.msk [vmem:[#allocation3 + $0x18] sm:$0xff] %vm548_vm7, %v531_v40 }
 0x15b   : > { %v580_v43 = vpop.permute.xlu0 %579 }
 0x15c   : > { %v724_v42 = vpop.permute.xlu1 %723  ;;  %v754_v44 = vld [vmem:[#allocation3] sm:$0xff]  ;;  %601 = vst.msk [vmem:[#allocation3 + $0x18] sm:$0xff] %vm597_vm8, %v580_v43 }
 0x15d   : > { %747 = vst.msk [vmem:[#allocation3 + $0x8] sm:$0xff] %vm745_vm11, %v724_v42  ;;  %1702 = vmatprep.mubr.msk.f32.mxu0 %vm774_vm12, %v754_v44 }
 0x15f   : > { %v437_v46 = vpop.permute.xlu0 %436 }
 0x160   : > { %v435_v45 = vpop.permute.xlu1 %434  ;;  %456 = vst.msk [vmem:[#allocation3 + $0x28] sm:$0xff] %vm450_vm4, %v437_v46 }
 0x161   : > { %455 = vst.msk [vmem:[#allocation3 + $0x20] sm:$0xff] %vm450_vm4, %v435_v45 }
 0x163   : > { %v630_v48 = vpop.permute.xlu0 %629 }
 0x164   : > { %v628_v47 = vpop.permute.xlu1 %627  ;;  %v755_v49 = vld [vmem:[#allocation3 + $0x8] sm:$0xff]  ;;  %651 = vst.msk [vmem:[#allocation3 + $0x18] sm:$0xff] %vm647_vm9, %v630_v48 }
 0x165   : > { %650 = vst.msk [vmem:[#allocation3 + $0x10] sm:$0xff] %vm647_vm9, %v628_v47  ;;  %1703 = vmatmul.mubr.msk.f32.vlgmr.msra.gmra.mrb[0].mxu0 %vm774_vm12, %v755_v49 }
 0x167   : > { %v486_v51 = vpop.permute.xlu0 %485 }
 0x168   : > { %v484_v50 = vpop.permute.xlu1 %483  ;;  %505 = vst.msk [vmem:[#allocation3 + $0x28] sm:$0xff] %vm499_vm6, %v486_v51 }
 0x169   : > { %504 = vst.msk [vmem:[#allocation3 + $0x20] sm:$0xff] %vm499_vm6, %v484_v50 }
 0x16b   : > { %v679_v53 = vpop.permute.xlu0 %678 }
 0x16c   : > { %v677_v52 = vpop.permute.xlu1 %676  ;;  %700 = vst.msk [vmem:[#allocation3 + $0x18] sm:$0xff] %vm696_vm10, %v679_v53  ;;  %v1371_v53 = vld [vmem:[%s2651_s3 + $0x8] sm:$0xff] }
 0x16d   : > { %699 = vst.msk [vmem:[#allocation3 + $0x10] sm:$0xff] %vm696_vm10, %v677_v52  ;;  %v1370_v52 = vld [vmem:[%s2651_s3] sm:$0xff] }
 0x16f   : > { %v390_v55 = vpop.permute.xlu0 %389 }
 0x170   : > { %v533_v54 = vpop.permute.xlu1 %532  ;;  %408 = vst.msk [vmem:[#allocation3 + $0x30] sm:$0xff] %vm401_vm3, %v390_v55  ;;  %v1752_v55 = vpack.c.bf16 %v1371_v53, %v1370_v52 }
 0x171   : > { %553 = vst.msk [vmem:[#allocation3 + $0x20] sm:$0xff] %vm548_vm7, %v533_v54 }
 0x172   : > { %1753 = vmatprep.subr.bf16.mxu1 %v1752_v55 }
 0x173   : > { %v582_v57 = vpop.permute.xlu0 %581  ;;  %1755 = vmatpush3.bf16.msra.mxu1 %v1752_v55 }
 0x174   : > { %v726_v56 = vpop.permute.xlu1 %725  ;;  %602 = vst.msk [vmem:[#allocation3 + $0x20] sm:$0xff] %vm597_vm8, %v582_v57  ;;  %v1373_v57 = vld [vmem:[%s2651_s3 + $0x18] sm:$0xff] }
 0x175   : > { %748 = vst.msk [vmem:[#allocation3 + $0x10] sm:$0xff] %vm745_vm11, %v726_v56  ;;  %v1372_v56 = vld [vmem:[%s2651_s3 + $0x10] sm:$0xff] }
 0x177   : > { %v392_v59 = vpop.permute.xlu0 %391 }
 0x178   : > { %v535_v58 = vpop.permute.xlu1 %534  ;;  %409 = vst.msk [vmem:[#allocation3 + $0x38] sm:$0xff] %vm401_vm3, %v392_v59  ;;  %v1756_v59 = vpack.c.bf16 %v1373_v57, %v1372_v56  ;;  %vm1156_vm3 = vcmask 326912  }
 0x179   : > { %554 = vst.msk [vmem:[#allocation3 + $0x28] sm:$0xff] %vm548_vm7, %v535_v58 }
 0x17a   : > { %1757 = vmatprep.subr.bf16.mxu1 %v1756_v59 }
 0x17b   : > { %v584_v61 = vpop.permute.xlu0 %583  ;;  %1759 = vmatpush3.bf16.msra.mxu1 %v1756_v59 }
 0x17c   : > { %v728_v60 = vpop.permute.xlu1 %727  ;;  %v756_v62 = vld [vmem:[#allocation3 + $0x10] sm:$0xff]  ;;  %603 = vst.msk [vmem:[#allocation3 + $0x28] sm:$0xff] %vm597_vm8, %v584_v61 }
 0x17d   : > { %749 = vst.msk [vmem:[#allocation3 + $0x18] sm:$0xff] %vm745_vm11, %v728_v60  ;;  %1705 = vmatprep.mubr.msk.f32.mxu0 %vm774_vm12, %v756_v62 }
 0x17f   : > { %v441_v1 = vpop.permute.xlu0 %440 }
 0x180   : > { %v439_v63 = vpop.permute.xlu1 %438  ;;  %458 = vst.msk [vmem:[#allocation3 + $0x38] sm:$0xff] %vm450_vm4, %v441_v1  ;;  %v1374_v1 = vld [vmem:[%s2651_s3 + $0x20] sm:$0xff] }
 0x181   : > { %457 = vst.msk [vmem:[#allocation3 + $0x30] sm:$0xff] %vm450_vm4, %v439_v63  ;;  %vm1205_vm4 = vcmask 392512  }
 0x183   : > { %v634_v3 = vpop.permute.xlu0 %633 }
 0x184   : > { %v632_v2 = vpop.permute.xlu1 %631  ;;  %v757_v4 = vld [vmem:[#allocation3 + $0x18] sm:$0xff]  ;;  %653 = vst.msk [vmem:[#allocation3 + $0x28] sm:$0xff] %vm647_vm9, %v634_v3 }
 0x185   : > { %652 = vst.msk [vmem:[#allocation3 + $0x20] sm:$0xff] %vm647_vm9, %v632_v2  ;;  %1706 = vmatmul.mubr.msk.f32.gmra.mrb[2].mxu0 %vm774_vm12, %v757_v4  ;;  %v1375_v2 = vld [vmem:[%s2651_s3 + $0x28] sm:$0xff] }
 0x187   : > { %v490_v6 = vpop.permute.xlu0 %489 }
 0x188   : > { %v488_v5 = vpop.permute.xlu1 %487  ;;  %507 = vst.msk [vmem:[#allocation3 + $0x38] sm:$0xff] %vm499_vm6, %v490_v6 }
 0x189   : > { %506 = vst.msk [vmem:[#allocation3 + $0x30] sm:$0xff] %vm499_vm6, %v488_v5  ;;  %v1760_v5 = vpack.c.bf16 %v1375_v2, %v1374_v1  ;;  %vm1304_vm6 = vcmask 523712  }
 0x18b   : > { %v683_v8 = vpop.permute.xlu0 %682  ;;  %1761 = vmatprep.subr.bf16.mxu1 %v1760_v5 }
 0x18c   : > { %v681_v7 = vpop.permute.xlu1 %680  ;;  %702 = vst.msk [vmem:[#allocation3 + $0x28] sm:$0xff] %vm696_vm10, %v683_v8  ;;  %1763 = vmatpush3.bf16.msra.mxu1 %v1760_v5  ;;  %v1377_v8 = vld [vmem:[%s2651_s3 + $0x38] sm:$0xff] }
 0x18d   : > { %701 = vst.msk [vmem:[#allocation3 + $0x20] sm:$0xff] %vm696_vm10, %v681_v7  ;;  %v1376_v7 = vld [vmem:[%s2651_s3 + $0x30] sm:$0xff] }
 0x18f   : > { %v539_v10 = vpop.permute.xlu0 %538 }
 0x190   : > { %v537_v9 = vpop.permute.xlu1 %536  ;;  %556 = vst.msk [vmem:[#allocation3 + $0x38] sm:$0xff] %vm548_vm7, %v539_v10  ;;  %v1378_v10 = vld [vmem:[%s2651_s3 + $0x40] sm:$0xff] }
 0x191   : > { %555 = vst.msk [vmem:[#allocation3 + $0x30] sm:$0xff] %vm548_vm7, %v537_v9  ;;  %v1764_v9 = vpack.c.bf16 %v1377_v8, %v1376_v7  ;;  %vm1353_vm7 = vcmask 589312  }
 0x193   : > { %v732_v12 = vpop.permute.xlu0 %731  ;;  %1765 = vmatprep.subr.bf16.mxu1 %v1764_v9 }
 0x194   : > { %v730_v11 = vpop.permute.xlu1 %729  ;;  %751 = vst.msk [vmem:[#allocation3 + $0x28] sm:$0xff] %vm745_vm11, %v732_v12  ;;  %1767 = vmatpush3.bf16.msra.mxu1 %v1764_v9 }
 0x195   : > { %750 = vst.msk [vmem:[#allocation3 + $0x20] sm:$0xff] %vm745_vm11, %v730_v11  ;;  %1730 = vmatprep.subr.mxu1 %v1378_v10 }
 0x197   : > { %v636_v15 = vpop.permute.xlu0 %635 }
 0x198   : > { %v586_v13 = vpop.permute.xlu1 %585  ;;  %1731 = vmatpush3.msra.mxu1 %v1378_v10 }
 0x199   : > { %604 = vst.msk [vmem:[#allocation3 + $0x30] sm:$0xff] %vm597_vm8, %v586_v13 }
 0x19a   : > { %654 = vst.msk [vmem:[#allocation3 + $0x30] sm:$0xff] %vm647_vm9, %v636_v15 }
 0x19b   : > { %v685_v17 = vpop.permute.xlu0 %684  ;;  %v759_v19 = vld [vmem:[#allocation3 + $0x28] sm:$0xff] }
 0x19c   : > { %v588_v16 = vpop.permute.xlu1 %587  ;;  %v758_v18 = vld [vmem:[#allocation3 + $0x20] sm:$0xff]  ;;  %703 = vst.msk [vmem:[#allocation3 + $0x30] sm:$0xff] %vm696_vm10, %v685_v17 }
 0x19d   : > { %605 = vst.msk [vmem:[#allocation3 + $0x38] sm:$0xff] %vm597_vm8, %v588_v16  ;;  %1708 = vmatprep.mubr.msk.f32.mxu0 %vm774_vm12, %v758_v18  ;;  %vm1386_vm8 = vcmask 588800  }
 0x19e   : > { %655 = vst.msk [vmem:[#allocation3 + $0x38] sm:$0xff] %vm647_vm9, %v2261_v14  ;;  %1709 = vmatmul.mubr.msk.f32.gmra.mrb[4].mxu0 %vm774_vm12, %v759_v19  ;;  %v1222_v14 = vld [vmem:[#allocation4 + $0x90] sm:$0xff] }
 0x19f   : > { %v734_v20 = vpop.permute.xlu0 %733  ;;  %1245 = vrot.lane.b32.xlu1 %v1222_v14, %s1942_s12 }
 0x1a0   : > { %v687_v21 = vpop.permute.xlu1 %686  ;;  %752 = vst.msk [vmem:[#allocation3 + $0x30] sm:$0xff] %vm745_vm11, %v734_v20 }
 0x1a1   : > { %704 = vst.msk [vmem:[#allocation3 + $0x38] sm:$0xff] %vm696_vm10, %v687_v21 }
 0x1a3   : > { %1294 = vrot.lane.b32.xlu1 %v1271_v26, %s1943_s16 }
 0x1a4   : > { %v736_v22 = vpop.permute.xlu1 %735 }
 0x1a5   : > { %753 = vst.msk [vmem:[#allocation3 + $0x38] sm:$0xff] %vm745_vm11, %v736_v22 }
 0x1a7   : > { %v760_v23 = vld [vmem:[#allocation3 + $0x30] sm:$0xff] }
 0x1a8   : > { %1711 = vmatprep.mubr.msk.f32.mxu0 %vm774_vm12, %v760_v23 }
 0x1ab   : > { %v986_v29 = vpop.permute.xlu0 %985 }
 0x1ac   : > { %v761_v24 = vld [vmem:[#allocation3 + $0x38] sm:$0xff]  ;;  %1010 = vst.msk [vmem:[#allocation5] sm:$0xff] %vm1009_vm0, %v986_v29 }
 0x1ad   : > { %1712 = vmatmul.mubr.msk.f32.gmra.mrb[6].mxu0 %vm774_vm12, %v761_v24 }
 0x1af   : > { %v1035_v0 = vpop.permute.xlu0 %1034 }
 0x1b0   : > { %1059 = vst.msk [vmem:[#allocation5] sm:$0xff] %vm1058_vm1, %v1035_v0 }
 0x211   : > { %v2497_v27 = vpop.permute.xlu1 %1245 }
 0x215   : > { %v2503_v29 = vpop.permute.xlu1 %1294 }
 0x238   : > { %v1704_v31 = vpop.f32.mrb[0].mxu0 }
 0x239   : > { %v875_v32 = vadd.f32 %v1704_v31, %v2397_v30  ;;  %v869_v33 = vpop.f32.mrb[1].mxu0 }
 0x23a   : > { %v870_v34 = vadd.f32 %v2397_v30, %v869_v33 }
 0x23b   : > { %v909_v35 = vmax.f32 %v875_v32, 0.0 }
 0x23c   : > { %v908_v36 = vmax.f32 %v870_v34, 0.0 }
 0x23d   : > { %946 = vst.msk [vmem:[#allocation4 + $0x21] sm:$0xff] %vm916_vm13, %v909_v35 }
 0x23e   : > { %945 = vst.msk [vmem:[#allocation4 + $0x11] sm:$0xff] %vm916_vm13, %v908_v36 }
 0x244   : > { %v1117_v37 = vld [vmem:[#allocation4 + $0x21] sm:$0xff] }
 0x245   : > { %v1068_v38 = vld [vmem:[#allocation4 + $0x20] sm:$0xff]  ;;  %1134 = vrot.lane.b32.xlu0 %v1117_v37, %s2655_s11  ;;  %v1067_v39 = vld [vmem:[#allocation4 + $0x10] sm:$0xff] }
 0x246   : > { %1085 = vrot.lane.b32.xlu1 %v1068_v38, %s1935_s14  ;;  %963 = vst.msk [vmem:[#allocation5 + $0x10] sm:$0xff] %vm916_vm13, %v1068_v38  ;;  %962 = vst.msk [vmem:[#allocation5 + $0x8] sm:$0xff] %vm916_vm13, %v1067_v39  ;;  %v1166_v40 = vld [vmem:[#allocation4 + $0x22] sm:$0xff]  ;;  %v1116_v41 = vld [vmem:[#allocation4 + $0x11] sm:$0xff] }
 0x247   : > { %v1019_v48 = vld [vmem:[#allocation4 + $0x12] sm:$0xff] }
 0x249   : > { %1183 = vrot.lane.b32.xlu0 %v1166_v40, %s1944_s17 }
 0x24a   : > { %989 = vrot.lane.b32.xlu1 %v1117_v37, %s1936_s15 }
 0x24d   : > { %1083 = vrot.lane.b32.xlu0 %v1067_v39, %s1935_s14 }
 0x24e   : > { %1038 = vrot.lane.b32.xlu1 %v1166_v40, %s1938_s8 }
 0x251   : > { %1132 = vrot.lane.b32.xlu0 %v1116_v41, %s2655_s11 }
 0x252   : > { %1231 = vrot.lane.b32.xlu1 %v1068_v38, %s1942_s12 }
 0x256   : > { %1280 = vrot.lane.b32.xlu1 %v1117_v37, %s1943_s16 }
 0x258   : > { %v1707_v42 = vpop.f32.mrb[2].mxu0 }
 0x259   : > { %v885_v43 = vadd.f32 %v1707_v42, %v2397_v30  ;;  %v879_v44 = vpop.f32.mrb[3].mxu0 }
 0x25a   : > { %1329 = vrot.lane.b32.xlu1 %v1166_v40, %s1945_s25  ;;  %v880_v45 = vadd.f32 %v2397_v30, %v879_v44 }
 0x25b   : > { %v911_v46 = vmax.f32 %v885_v43, 0.0 }
 0x25c   : > { %v910_v47 = vmax.f32 %v880_v45, 0.0 }
 0x25d   : > { %948 = vst.msk [vmem:[#allocation4 + $0x41] sm:$0xff] %vm916_vm13, %v911_v46 }
 0x25e   : > { %987 = vrot.lane.b32.xlu1 %v1116_v41, %s1936_s15  ;;  %947 = vst.msk [vmem:[#allocation4 + $0x31] sm:$0xff] %vm916_vm13, %v910_v47 }
 0x262   : > { %1036 = vrot.lane.b32.xlu1 %v1019_v48, %s1938_s8 }
 0x264   : > { %v1070_v49 = vld [vmem:[#allocation4 + $0x40] sm:$0xff] }
 0x265   : > { %1089 = vrot.lane.b32.xlu0 %v1070_v49, %s1935_s14  ;;  %v1216_v50 = vld [vmem:[#allocation4 + $0x30] sm:$0xff]  ;;  %965 = vst.msk [vmem:[#allocation5 + $0x20] sm:$0xff] %vm916_vm13, %v1070_v49  ;;  %v1119_v51 = vld [vmem:[#allocation4 + $0x41] sm:$0xff] }
 0x266   : > { %1181 = vrot.lane.b32.xlu1 %v1019_v48, %s1944_s17  ;;  %964 = vst.msk [vmem:[#allocation5 + $0x18] sm:$0xff] %vm916_vm13, %v1216_v50  ;;  %v1022_v54 = vld [vmem:[#allocation4 + $0x42] sm:$0xff]  ;;  %v972_v58 = vld [vmem:[#allocation4 + $0x31] sm:$0xff] }
 0x267   : > { %v1021_v4 = vld [vmem:[#allocation4 + $0x32] sm:$0xff] }
 0x269   : > { %993 = vrot.lane.b32.xlu0 %v1119_v51, %s1936_s15 }
 0x26a   : > { %1138 = vrot.lane.b32.xlu1 %v1119_v51, %s2655_s11  ;;  %s2662_s11 = smov 32  }
 0x26d   : > { %1187 = vrot.lane.b32.xlu0 %v1022_v54, %s1944_s17 }
 0x26e   : > { %1042 = vrot.lane.b32.xlu1 %v1022_v54, %s1938_s8 }
 0x271   : > { %991 = vrot.lane.b32.xlu0 %v972_v58, %s1936_s15  ;;  %v1710_v60 = vpop.f32.mrb[4].mxu0 }
 0x272   : > { %1235 = vrot.lane.b32.xlu1 %v1070_v49, %s1942_s12  ;;  %v895_v61 = vadd.f32 %v1710_v60, %v2397_v30  ;;  %v889_v62 = vpop.f32.mrb[5].mxu0 }
 0x273   : > { %v890_v63 = vadd.f32 %v2397_v30, %v889_v62 }
 0x274   : > { %v913_v3 = vmax.f32 %v895_v61, 0.0 }
 0x275   : > { %v912_v6 = vmax.f32 %v890_v63, 0.0  ;;  %1040 = vrot.lane.b32.xlu0 %v1021_v4, %s1938_s8 }
 0x276   : > { %1284 = vrot.lane.b32.xlu1 %v1119_v51, %s1943_s16  ;;  %950 = vst.msk [vmem:[#allocation4 + $0x61] sm:$0xff] %vm916_vm13, %v913_v3 }
 0x277   : > { %949 = vst.msk [vmem:[#allocation4 + $0x51] sm:$0xff] %vm916_vm13, %v912_v6 }
 0x279   : > { %1233 = vrot.lane.b32.xlu0 %v1216_v50, %s1942_s12 }
 0x27a   : > { %1333 = vrot.lane.b32.xlu1 %v1022_v54, %s1945_s25 }
 0x27d   : > { %1282 = vrot.lane.b32.xlu0 %v972_v58, %s1943_s16  ;;  %v1072_v11 = vld [vmem:[#allocation4 + $0x60] sm:$0xff] }
 0x27e   : > { %1087 = vrot.lane.b32.xlu1 %v1216_v50, %s1935_s14  ;;  %v1218_v12 = vld [vmem:[#allocation4 + $0x50] sm:$0xff]  ;;  %967 = vst.msk [vmem:[#allocation5 + $0x30] sm:$0xff] %vm916_vm13, %v1072_v11  ;;  %v1121_v20 = vld [vmem:[#allocation4 + $0x61] sm:$0xff] }
 0x27f   : > { %966 = vst.msk [vmem:[#allocation5 + $0x28] sm:$0xff] %vm916_vm13, %v1218_v12  ;;  %v1024_v21 = vld [vmem:[#allocation4 + $0x62] sm:$0xff]  ;;  %v974_v23 = vld [vmem:[#allocation4 + $0x51] sm:$0xff] }
 0x280   : > { %v1713_v13 = vpop.f32.mrb[6].mxu0  ;;  %v1023_v24 = vld [vmem:[#allocation4 + $0x52] sm:$0xff] }
 0x281   : > { %1185 = vrot.lane.b32.xlu0 %v1021_v4, %s1944_s17  ;;  %v905_v15 = vadd.f32 %v1713_v13, %v2397_v30  ;;  %v899_v16 = vpop.f32.mrb[7].mxu0 }
 0x282   : > { %1136 = vrot.lane.b32.xlu1 %v972_v58, %s2662_s11  ;;  %v900_v17 = vadd.f32 %v2397_v30, %v899_v16  ;;  %v1320_v30 = vld [vmem:[#allocation4 + $0x92] sm:$0xff] }
 0x283   : > { %v915_v18 = vmax.f32 %v905_v15, 0.0 }
 0x284   : > { %v914_v19 = vmax.f32 %v900_v17, 0.0 }
 0x285   : > { %1093 = vrot.lane.b32.xlu0 %v1072_v11, %s1935_s14  ;;  %952 = vst.msk [vmem:[#allocation4 + $0x81] sm:$0xff] %vm916_vm13, %v915_v18 }
 0x286   : > { %1331 = vrot.lane.b32.xlu1 %v1021_v4, %s1945_s25  ;;  %951 = vst.msk [vmem:[#allocation4 + $0x71] sm:$0xff] %vm916_vm13, %v914_v19 }
 0x289   : > { %997 = vrot.lane.b32.xlu0 %v1121_v20, %s1936_s15 }
 0x28a   : > { %1142 = vrot.lane.b32.xlu1 %v1121_v20, %s2662_s11 }
 0x28c   : > { %v1074_v14 = vld [vmem:[#allocation4 + $0x80] sm:$0xff] }
 0x28d   : > { %1191 = vrot.lane.b32.xlu0 %v1024_v21, %s1944_s17  ;;  %v1073_v22 = vld [vmem:[#allocation4 + $0x70] sm:$0xff]  ;;  %v1172_v25 = vld [vmem:[#allocation4 + $0x82] sm:$0xff] }
 0x28e   : > { %1046 = vrot.lane.b32.xlu1 %v1024_v21, %s1938_s8  ;;  %968 = vst.msk [vmem:[#allocation5 + $0x38] sm:$0xff] %vm916_vm13, %v1073_v22  ;;  %v1123_v26 = vld [vmem:[#allocation4 + $0x81] sm:$0xff]  ;;  %v1122_v28 = vld [vmem:[#allocation4 + $0x71] sm:$0xff] }
 0x28f   : > { %v1171_v0 = vld [vmem:[#allocation4 + $0x72] sm:$0xff] }
 0x291   : > { %995 = vrot.lane.b32.xlu0 %v974_v23, %s1936_s15 }
 0x292   : > { %1239 = vrot.lane.b32.xlu1 %v1072_v11, %s1942_s12 }
 0x295   : > { %1044 = vrot.lane.b32.xlu0 %v1023_v24, %s1938_s8 }
 0x296   : > { %1288 = vrot.lane.b32.xlu1 %v1121_v20, %s1943_s16 }
 0x299   : > { %1237 = vrot.lane.b32.xlu0 %v1218_v12, %s1942_s12 }
 0x29a   : > { %1337 = vrot.lane.b32.xlu1 %v1024_v21, %s1945_s25 }
 0x29d   : > { %1286 = vrot.lane.b32.xlu0 %v974_v23, %s1943_s16 }
 0x29e   : > { %1091 = vrot.lane.b32.xlu1 %v1218_v12, %s1935_s14 }
 0x2a1   : > { %1189 = vrot.lane.b32.xlu0 %v1023_v24, %s1944_s17 }
 0x2a2   : > { %1140 = vrot.lane.b32.xlu1 %v974_v23, %s2662_s11 }
 0x2a5   : > { %1097 = vrot.lane.b32.xlu0 %v1074_v14, %s1935_s14 }
 0x2a6   : > { %1335 = vrot.lane.b32.xlu1 %v1023_v24, %s1945_s25 }
 0x2a9   : > { %1146 = vrot.lane.b32.xlu0 %v1123_v26, %s2662_s11 }
 0x2aa   : > { %1195 = vrot.lane.b32.xlu1 %v1172_v25, %s1944_s17 }
 0x2ad   : > { %1243 = vrot.lane.b32.xlu0 %v1074_v14, %s1942_s12 }
 0x2ae   : > { %1095 = vrot.lane.b32.xlu1 %v1073_v22, %s1935_s14 }
 0x2b1   : > { %1292 = vrot.lane.b32.xlu0 %v1123_v26, %s1943_s16 }
 0x2b2   : > { %1144 = vrot.lane.b32.xlu1 %v1122_v28, %s2662_s11 }
 0x2b5   : > { %999 = vrot.lane.b32.xlu0 %v1122_v28, %s1936_s15 }
 0x2b6   : > { %1193 = vrot.lane.b32.xlu1 %v1171_v0, %s1944_s17  ;;  %s1661_s17 = sshll.u32 %s1999_s22, 10  ;;  %s1533_s22 = scalar_lea.sflag [#allocation8], %s2082_s23 }
 0x2b7   : > { %v1135_v32 = vpop.permute.xlu0 %1134  ;;  %s2599_s10 = scalar_lea.hbm %s2653_s5, %s1661_s17 }
 0x2b8   : > { %v1086_v31 = vpop.permute.xlu1 %1085 }
 0x2b9   : > { %1048 = vrot.lane.b32.xlu0 %v1171_v0, %s1938_s8 }
 0x2ba   : > { %1343 = vrot.lane.b32.xlu1 %v1320_v30, %s1945_s25 }
 0x2bb   : > { %v1184_v34 = vpop.permute.xlu0 %1183 }
 0x2bc   : > { %v990_v33 = vpop.permute.xlu1 %989 }
 0x2bd   : > { %1012 = vst.msk [vmem:[#allocation5 + $0x10] sm:$0xff] %vm1009_vm0, %v990_v33  ;;  %1241 = vrot.lane.b32.xlu0 %v1073_v22, %s1942_s12  ;;  %s1627_s12 = sshll.u32 %s2082_s23, 6 }
 0x2bf   : > { %v1084_v36 = vpop.permute.xlu0 %1083 }
 0x2c0   : > { %v1039_v35 = vpop.permute.xlu1 %1038  ;;  %1108 = vst.msk [vmem:[#allocation5] sm:$0xff] %vm1107_vm2, %v1084_v36 }
 0x2c1   : > { %1061 = vst.msk [vmem:[#allocation5 + $0x10] sm:$0xff] %vm1058_vm1, %v1039_v35  ;;  %1290 = vrot.lane.b32.xlu0 %v1122_v28, %s1943_s16  ;;  %s242_s16 = scalar_lea.vmem [#allocation9], %s1627_s12 }
 0x2c3   : > { %v1133_v38 = vpop.permute.xlu0 %1132 }
 0x2c4   : > { %v1232_v37 = vpop.permute.xlu1 %1231  ;;  %1157 = vst.msk [vmem:[#allocation5] sm:$0xff] %vm1156_vm3, %v1133_v38 }
 0x2c5   : > { %1339 = vrot.lane.b32.xlu0 %v1171_v0, %s1945_s25 }
 0x2c8   : > { %v1281_v39 = vpop.permute.xlu1 %1280 }
 0x2c9   : > { %1341 = vrot.lane.b32.xlu0 %v1172_v25, %s1945_s25  ;;  %s1546_s25 = sshll.u32 %s242_s16, 4  ;;  %s2601_s25 = int_to_ptr.vmem [resolvable:$true] %s1546_s25 }
 0x2ca   : > { %s1861_s7 = scalar_lea.vmem %s2601_s25, 1024  ;;  %p1868_p8 = scmp.lt.s32.totalorder %s2601_s25, %s1866_s26 }
 0x2cb   : > { %p1862_p6 = scmp.ne.s32.totalorder %s2601_s25, %s1861_s7  ;;  %p1869_p10 = scmp.lt.s32.totalorder %s1867_s28, %s1861_s7 }
 0x2cc   : > { %v1330_v40 = vpop.permute.xlu1 %1329 }
 0x2cd   : > { %p1863_p12 = pnand %p1862_p6, %p2663_p11  ;;  %p1870_p0 = por %p1869_p10, %p1868_p8 }
 0x2cf   : > { %p1864_p13 = pneg %p1863_p12 }
 0x2d0   : > { %v988_v41 = vpop.permute.xlu1 %987 }
 0x2d1   : > { %1011 = vst.msk [vmem:[#allocation5 + $0x8] sm:$0xff] %vm1009_vm0, %v988_v41  ;;  %p1871_p2 = pnand %p1870_p0, %p1864_p13 }
 0x2d4   : > { %v1037_v42 = vpop.permute.xlu1 %1036 }
 0x2d5   : > { %1060 = vst.msk [vmem:[#allocation5 + $0x8] sm:$0xff] %vm1058_vm1, %v1037_v42 }
 0x2d6   : > { %1109 = vst.msk [vmem:[#allocation5 + $0x8] sm:$0xff] %vm1107_vm2, %v1086_v31 }
 0x2d7   : > { %1158 = vst.msk [vmem:[#allocation5 + $0x8] sm:$0xff] %vm1156_vm3, %v1135_v32  ;;  %v1090_v44 = vpop.permute.xlu0 %1089 }
 0x2d8   : > { %v1182_v43 = vpop.permute.xlu1 %1181  ;;  %1207 = vst.msk [vmem:[#allocation5 + $0x8] sm:$0xff] %vm1205_vm4, %v1184_v34 }
 0x2d9   : > { %1206 = vst.msk [vmem:[#allocation5] sm:$0xff] %vm1205_vm4, %v1182_v43 }
 0x2da   : > { %1256 = vst.msk [vmem:[#allocation5] sm:$0xff] %vm1255_vm5, %v1232_v37 }
 0x2db   : > { %1305 = vst.msk [vmem:[#allocation5] sm:$0xff] %vm1304_vm6, %v1281_v39  ;;  %v994_v46 = vpop.permute.xlu0 %993 }
 0x2dc   : > { %1354 = vst.msk [vmem:[#allocation5] sm:$0xff] %vm1353_vm7, %v1330_v40  ;;  %v1139_v45 = vpop.permute.xlu1 %1138 }
 0x2dd   : > { %1014 = vst.msk [vmem:[#allocation5 + $0x20] sm:$0xff] %vm1009_vm0, %v994_v46 }
 0x2df   : > { %v1188_v48 = vpop.permute.xlu0 %1187 }
 0x2e0   : > { %v1043_v47 = vpop.permute.xlu1 %1042 }
 0x2e1   : > { %1063 = vst.msk [vmem:[#allocation5 + $0x20] sm:$0xff] %vm1058_vm1, %v1043_v47 }
 0x2e3   : > { %v1362_v49 = vld [vmem:[#allocation5] sm:$0xff]  ;;  %v992_v51 = vpop.permute.xlu0 %991 }
 0x2e4   : > { %v1236_v50 = vpop.permute.xlu1 %1235  ;;  %1732 = vmatprep.mubr.msk.f32.mxu1 %vm1386_vm8, %v1362_v49  ;;  %1013 = vst.msk [vmem:[#allocation5 + $0x18] sm:$0xff] %vm1009_vm0, %v992_v51 }
 0x2e7   : > { %v1041_v53 = vpop.permute.xlu0 %1040 }
 0x2e8   : > { %v1285_v52 = vpop.permute.xlu1 %1284  ;;  %1062 = vst.msk [vmem:[#allocation5 + $0x18] sm:$0xff] %vm1058_vm1, %v1041_v53 }
 0x2e9   : > { %1111 = vst.msk [vmem:[#allocation5 + $0x18] sm:$0xff] %vm1107_vm2, %v1090_v44 }
 0x2ea   : > { %1160 = vst.msk [vmem:[#allocation5 + $0x18] sm:$0xff] %vm1156_vm3, %v1139_v45 }
 0x2eb   : > { %1209 = vst.msk [vmem:[#allocation5 + $0x18] sm:$0xff] %vm1205_vm4, %v1188_v48  ;;  %v1234_v55 = vpop.permute.xlu0 %1233 }
 0x2ec   : > { %v1334_v54 = vpop.permute.xlu1 %1333  ;;  %1257 = vst.msk [vmem:[#allocation5 + $0x8] sm:$0xff] %vm1255_vm5, %v1234_v55 }
 0x2ef   : > { %v1283_v57 = vpop.permute.xlu0 %1282 }
 0x2f0   : > { %v1088_v56 = vpop.permute.xlu1 %1087  ;;  %1306 = vst.msk [vmem:[#allocation5 + $0x8] sm:$0xff] %vm1304_vm6, %v1283_v57 }
 0x2f1   : > { %1110 = vst.msk [vmem:[#allocation5 + $0x10] sm:$0xff] %vm1107_vm2, %v1088_v56 }
 0x2f3   : > { %v1186_v59 = vpop.permute.xlu0 %1185 }
 0x2f4   : > { %v1137_v58 = vpop.permute.xlu1 %1136 }
 0x2f5   : > { %1159 = vst.msk [vmem:[#allocation5 + $0x10] sm:$0xff] %vm1156_vm3, %v1137_v58 }
 0x2f6   : > { %1208 = vst.msk [vmem:[#allocation5 + $0x10] sm:$0xff] %vm1205_vm4, %v1186_v59 }
 0x2f7   : > { %1258 = vst.msk [vmem:[#allocation5 + $0x10] sm:$0xff] %vm1255_vm5, %v1236_v50  ;;  %v1094_v61 = vpop.permute.xlu0 %1093 }
 0x2f8   : > { %1307 = vst.msk [vmem:[#allocation5 + $0x10] sm:$0xff] %vm1304_vm6, %v1285_v52  ;;  %v1332_v60 = vpop.permute.xlu1 %1331 }
 0x2f9   : > { %1356 = vst.msk [vmem:[#allocation5 + $0x10] sm:$0xff] %vm1353_vm7, %v1334_v54  ;;  %1355 = vst.msk [vmem:[#allocation5 + $0x8] sm:$0xff] %vm1353_vm7, %v1332_v60 }
 0x2fb   : > { %v998_v63 = vpop.permute.xlu0 %997 }
 0x2fc   : > { %v1143_v62 = vpop.permute.xlu1 %1142  ;;  %1016 = vst.msk [vmem:[#allocation5 + $0x30] sm:$0xff] %vm1009_vm0, %v998_v63 }
 0x2ff   : > { %v1192_v2 = vpop.permute.xlu0 %1191 }
 0x300   : > { %v1047_v1 = vpop.permute.xlu1 %1046  ;;  %v1363_v3 = vld [vmem:[#allocation5 + $0x8] sm:$0xff]  ;;  %v1364_v4 = vld [vmem:[#allocation5 + $0x10] sm:$0xff] }
 0x301   : > { %1065 = vst.msk [vmem:[#allocation5 + $0x30] sm:$0xff] %vm1058_vm1, %v1047_v1  ;;  %1733 = vmatmul.mubr.msk.f32.vlgmr.msra.gmra.mrb[0].mxu1 %vm1386_vm8, %v1363_v3 }
 0x302   : > { %1735 = vmatprep.mubr.msk.f32.mxu1 %vm1386_vm8, %v1364_v4 }
 0x303   : > { %v996_v6 = vpop.permute.xlu0 %995 }
 0x304   : > { %v1240_v5 = vpop.permute.xlu1 %1239  ;;  %1015 = vst.msk [vmem:[#allocation5 + $0x28] sm:$0xff] %vm1009_vm0, %v996_v6 }
 0x307   : > { %v1045_v8 = vpop.permute.xlu0 %1044 }
 0x308   : > { %v1289_v7 = vpop.permute.xlu1 %1288  ;;  %1064 = vst.msk [vmem:[#allocation5 + $0x28] sm:$0xff] %vm1058_vm1, %v1045_v8 }
 0x309   : > { %1113 = vst.msk [vmem:[#allocation5 + $0x28] sm:$0xff] %vm1107_vm2, %v1094_v61 }
 0x30a   : > { %1162 = vst.msk [vmem:[#allocation5 + $0x28] sm:$0xff] %vm1156_vm3, %v1143_v62 }
 0x30b   : > { %1211 = vst.msk [vmem:[#allocation5 + $0x28] sm:$0xff] %vm1205_vm4, %v1192_v2  ;;  %v1238_v10 = vpop.permute.xlu0 %1237 }
 0x30c   : > { %v1338_v9 = vpop.permute.xlu1 %1337  ;;  %1259 = vst.msk [vmem:[#allocation5 + $0x18] sm:$0xff] %vm1255_vm5, %v1238_v10 }
 0x30f   : > { %v1287_v12 = vpop.permute.xlu0 %1286 }
 0x310   : > { %v1092_v11 = vpop.permute.xlu1 %1091  ;;  %1308 = vst.msk [vmem:[#allocation5 + $0x18] sm:$0xff] %vm1304_vm6, %v1287_v12 }
 0x311   : > { %1112 = vst.msk [vmem:[#allocation5 + $0x20] sm:$0xff] %vm1107_vm2, %v1092_v11 }
 0x313   : > { %v1190_v15 = vpop.permute.xlu0 %1189 }
 0x314   : > { %v1141_v13 = vpop.permute.xlu1 %1140 }
 0x315   : > { %1161 = vst.msk [vmem:[#allocation5 + $0x20] sm:$0xff] %vm1156_vm3, %v1141_v13 }
 0x316   : > { %1210 = vst.msk [vmem:[#allocation5 + $0x20] sm:$0xff] %vm1205_vm4, %v1190_v15 }
 0x317   : > { %1260 = vst.msk [vmem:[#allocation5 + $0x20] sm:$0xff] %vm1255_vm5, %v1240_v5  ;;  %v1098_v17 = vpop.permute.xlu0 %1097 }
 0x318   : > { %1309 = vst.msk [vmem:[#allocation5 + $0x20] sm:$0xff] %vm1304_vm6, %v1289_v7  ;;  %v1336_v16 = vpop.permute.xlu1 %1335 }
 0x319   : > { %1358 = vst.msk [vmem:[#allocation5 + $0x20] sm:$0xff] %vm1353_vm7, %v1338_v9  ;;  %1357 = vst.msk [vmem:[#allocation5 + $0x18] sm:$0xff] %vm1353_vm7, %v1336_v16 }
 0x31b   : > { %v1147_v19 = vpop.permute.xlu0 %1146 }
 0x31c   : > { %v1196_v18 = vpop.permute.xlu1 %1195 }
 0x31f   : > { %v1244_v21 = vpop.permute.xlu0 %1243 }
 0x320   : > { %v1096_v20 = vpop.permute.xlu1 %1095  ;;  %v1365_v22 = vld [vmem:[#allocation5 + $0x18] sm:$0xff]  ;;  %v1366_v23 = vld [vmem:[#allocation5 + $0x20] sm:$0xff] }
 0x321   : > { %1114 = vst.msk [vmem:[#allocation5 + $0x30] sm:$0xff] %vm1107_vm2, %v1096_v20  ;;  %1736 = vmatmul.mubr.msk.f32.gmra.mrb[2].mxu1 %vm1386_vm8, %v1365_v22 }
 0x322   : > { %1738 = vmatprep.mubr.msk.f32.mxu1 %vm1386_vm8, %v1366_v23 }
 0x323   : > { %v1293_v14 = vpop.permute.xlu0 %1292 }
 0x324   : > { %v1145_v24 = vpop.permute.xlu1 %1144 }
 0x325   : > { %1163 = vst.msk [vmem:[#allocation5 + $0x30] sm:$0xff] %vm1156_vm3, %v1145_v24 }
 0x327   : > { %v1000_v26 = vpop.permute.xlu0 %999 }
 0x328   : > { %v1194_v25 = vpop.permute.xlu1 %1193  ;;  %1017 = vst.msk [vmem:[#allocation5 + $0x38] sm:$0xff] %vm1009_vm0, %v1000_v26 }
 0x329   : > { %1212 = vst.msk [vmem:[#allocation5 + $0x30] sm:$0xff] %vm1205_vm4, %v1194_v25 }
 0x32a   : > { %1262 = vst.msk [vmem:[#allocation5 + $0x30] sm:$0xff] %vm1255_vm5, %v1244_v21 }
 0x32b   : > { %1311 = vst.msk [vmem:[#allocation5 + $0x30] sm:$0xff] %vm1304_vm6, %v1293_v14  ;;  %v1049_v28 = vpop.permute.xlu0 %1048 }
 0x32c   : > { %1066 = vst.msk [vmem:[#allocation5 + $0x38] sm:$0xff] %vm1058_vm1, %v1049_v28  ;;  %v1344_v30 = vpop.permute.xlu1 %1343 }
 0x32d   : > { %1115 = vst.msk [vmem:[#allocation5 + $0x38] sm:$0xff] %vm1107_vm2, %v1098_v17 }
 0x32e   : > { %1164 = vst.msk [vmem:[#allocation5 + $0x38] sm:$0xff] %vm1156_vm3, %v1147_v19 }
 0x32f   : > { %1213 = vst.msk [vmem:[#allocation5 + $0x38] sm:$0xff] %vm1205_vm4, %v1196_v18  ;;  %v1242_v0 = vpop.permute.xlu0 %1241 }
 0x330   : > { %1261 = vst.msk [vmem:[#allocation5 + $0x28] sm:$0xff] %vm1255_vm5, %v1242_v0  ;;  %1263 = vst.msk [vmem:[#allocation5 + $0x38] sm:$0xff] %vm1255_vm5, %v2497_v27 }
 0x331   : > { %1312 = vst.msk [vmem:[#allocation5 + $0x38] sm:$0xff] %vm1304_vm6, %v2503_v29  ;;  %v1646_v29 = vld [vmem:[%s2652_s4] ss:$0 sm:$0xff] }
 0x332   : > { %1361 = vst.msk [vmem:[#allocation5 + $0x38] sm:$0xff] %vm1353_vm7, %v1344_v30 }
 0x333   : > { %v1291_v31 = vpop.permute.xlu0 %1290 }
 0x334   : > { %1310 = vst.msk [vmem:[#allocation5 + $0x28] sm:$0xff] %vm1304_vm6, %v1291_v31 }
 0x337   : > { %v1340_v32 = vpop.permute.xlu0 %1339 }
 0x338   : > { %1359 = vst.msk [vmem:[#allocation5 + $0x28] sm:$0xff] %vm1353_vm7, %v1340_v32 }
 0x339   : > { %v1369_v35 = vld [vmem:[#allocation5 + $0x38] sm:$0xff] }
 0x33b   : > { %v1342_v33 = vpop.permute.xlu0 %1341 }
 0x33c   : > { %1360 = vst.msk [vmem:[#allocation5 + $0x30] sm:$0xff] %vm1353_vm7, %v1342_v33 }
 0x33f   : > { %v1367_v34 = vld [vmem:[#allocation5 + $0x28] sm:$0xff] }
 0x340   : > { %1739 = vmatmul.mubr.msk.f32.gmra.mrb[4].mxu1 %vm1386_vm8, %v1367_v34 }
 0x343   : > { %v1368_v27 = vld [vmem:[#allocation5 + $0x30] sm:$0xff] }
 0x344   : > { %1741 = vmatprep.mubr.msk.f32.mxu1 %vm1386_vm8, %v1368_v27 }
 0x345   : > { %1742 = vmatmul.mubr.msk.f32.gmra.mrb[6].mxu1 %vm1386_vm8, %v1369_v35 }
 0x3d4   : > { %v1734_v36 = vpop.f32.mrb[0].mxu1 }
 0x3d5   : > { %v1483_v37 = vadd.f32 %v1734_v36, %v1646_v29  ;;  %v1477_v38 = vpop.f32.mrb[1].mxu1 }
 0x3d6   : > { %v1478_v39 = vadd.f32 %v1646_v29, %v1477_v38 }
 0x3d7   : > { %v1517_v40 = vmax.f32 %v1483_v37, 0.0 }
 0x3d8   : > { %v1516_v41 = vmax.f32 %v1478_v39, 0.0 }
 0x3d9   : > { %1525 = vst.msk [vmem:[%s242_s16 + $0x8] sm:$0xff] %vm916_vm13, %v1517_v40 }
 0x3da   : > { %1524 = vst.msk [vmem:[%s242_s16] sm:$0xff] %vm916_vm13, %v1516_v41 }
 0x3f4   : > { %v1737_v42 = vpop.f32.mrb[2].mxu1 }
 0x3f5   : > { %v1493_v43 = vadd.f32 %v1737_v42, %v1646_v29  ;;  %v1487_v44 = vpop.f32.mrb[3].mxu1 }
 0x3f6   : > { %v1488_v45 = vadd.f32 %v1646_v29, %v1487_v44 }
 0x3f7   : > { %v1519_v46 = vmax.f32 %v1493_v43, 0.0 }
 0x3f8   : > { %v1518_v47 = vmax.f32 %v1488_v45, 0.0 }
 0x3f9   : > { %1527 = vst.msk [vmem:[%s242_s16 + $0x18] sm:$0xff] %vm916_vm13, %v1519_v46 }
 0x3fa   : > { %1526 = vst.msk [vmem:[%s242_s16 + $0x10] sm:$0xff] %vm916_vm13, %v1518_v47 }
 0x413   : > { %v1740_v48 = vpop.f32.mrb[4].mxu1 }
 0x414   : > { %v1503_v49 = vadd.f32 %v1740_v48, %v1646_v29  ;;  %v1497_v50 = vpop.f32.mrb[5].mxu1 }
 0x415   : > { %v1498_v51 = vadd.f32 %v1646_v29, %v1497_v50 }
 0x416   : > { %v1521_v52 = vmax.f32 %v1503_v49, 0.0 }
 0x417   : > { %v1520_v53 = vmax.f32 %v1498_v51, 0.0 }
 0x418   : > { %1529 = vst.msk [vmem:[%s242_s16 + $0x28] sm:$0xff] %vm916_vm13, %v1521_v52  ;;  %v1743_v54 = vpop.f32.mrb[6].mxu1 }
 0x419   : > { %1528 = vst.msk [vmem:[%s242_s16 + $0x20] sm:$0xff] %vm916_vm13, %v1520_v53  ;;  %v1513_v55 = vadd.f32 %v1743_v54, %v1646_v29  ;;  %v1507_v56 = vpop.f32.mrb[7].mxu1 }
 0x41a   : > { %v1508_v57 = vadd.f32 %v1646_v29, %v1507_v56 }
 0x41b   : > { %v1523_v58 = vmax.f32 %v1513_v55, 0.0 }
 0x41c   : > { %v1522_v59 = vmax.f32 %v1508_v57, 0.0 }
 0x41d   : > { %1531 = vst.msk [vmem:[%s242_s16 + $0x38] sm:$0xff] %vm916_vm13, %v1523_v58 }
 0x41e   : > { %1530 = vst.msk [vmem:[%s242_s16 + $0x30] sm:$0xff] %vm916_vm13, %v1522_v59 }
 0x41f   : > { %1874 = shalt.err (!%p1871_p2)
}
 0x420   : > { %s1875_s11 = scalar_lea.hbm %s2599_s10, 1024  ;;  %s1879_s12 = scalar_lea.hbm %s2653_s5, 2048 }
 0x421   : > { %p1876_p4 = scmp.ne.s32.totalorder %s2599_s10, %s1875_s11  ;;  %p1880_p9 = scmp.lt.u32.totalorder %s2599_s10, %s2653_s5 }
 0x422   : > { %p1881_p1 = scmp.lt.u32.totalorder %s1879_s12, %s1875_s11  ;;  %p1883_p6 = scmp.lt.u32.totalorder %s1875_s11, %s2599_s10 }
 0x423   : > { %p1877_p5 = pnand %p1876_p4, %p2663_p11 }
 0x424   : > { %p1882_p3 = por %p1881_p1, %p1880_p9 }
 0x425   : > { %p1878_p7 = pneg %p1877_p5 }
 0x426   : > { %p1884_p12 = por %p1883_p6, %p1882_p3 }
 0x428   : > { %p1885_p13 = pnand %p1884_p12, %p1878_p7 }
 0x42a   : > { %1888 = shalt.err (!%p1885_p13)
}
 0x42b   : > { %s1947_s29 = smov 128  }
 0x42c   : > { %1770 = dma.vmem_to_hbm [thread:$0]  (%p2663_p11), %s2601_s25, 1024, %s2599_s10, %s1533_s22, %s1947_s29, %s1947_s29, %s1936_s15  }
 0x42d PF: > { %s1561_s9 = sand.u32 1, %s1915_s18   ;;  %p2664_p8 = scmp.ne.s32.totalorder %s2660_s6, 0 }
 0x42e   : > { %p2665_p10 = scmp.ge.s32.totalorder %s1927_s21, 2  ;;  %s1562_s7 = scalar_lea.sflag [#allocation8], %s1561_s9 }
 0x430   : > { %p1777_p0 = pnand %p2665_p10, %p2664_p8 }
 0x432   : > { %1910 = dma.done.wait (!%p1777_p0), %s1562_s7, 1024  }
 0x433   : > { %1912 = vsyncadd (!%p1777_p0), %s1562_s7, 4294966272  ;;  %p18_p2 = scmp.ge.s32.totalorder %s2003_s24, 4   ;;  %s2666_s18 = smov %s1919_s19 }
 0x434   : > { %s2667_s19 = smov %s1923_s20  ;;  %s2668_s20 = smov %s2015_s27 }
 0x435   : > { %s2669_s21 = smov %s2003_s24  ;;  %20 = sbr.rel (!%p18_p2) target bundleno = 5 (0x5), region = 92 }
 0x43c   :  { %1567 = vsyncpa [#allocation7], 1 }
 0x43d   :  { %1569 = vsyncpa [#allocation7 + $0x1], 1 }
 0x43e   :  { %1570 = vsyncpa [#allocation8], 1 }
 0x43f   :  { %1572 = vsyncpa [#allocation8 + $0x1], 1 }

</bundles_post_ra>
